<compile_context>
chip_gen: v7x
topology: tpu7x:2x2x1
jax: 0.10.0
libtpu: 0.0.40
codegen_flags: <defaults>
</compile_context>

<pallas_src>
import functools

import jax
import jax.numpy as jnp
from jax.experimental import pallas as pl
from jax.experimental.pallas import tpu as pltpu


def _dwsep_kernel(x_ref, p_ref, b_ref, o_ref, *, K, stride, TH, Wo, flatten_out):
    """Fused depthwise(KxK, groups=Cin) + pointwise(1x1) conv, NCHW-native.

    Grid: (batch n, output-row tile h).

    x_ref: (1, Cin, Hp, Wp)   padded input image of batch n (VMEM); block index
                              constant in h -> fetched once per batch, revisited.
    p_ref: (Cin*K*K + Cout*Cin,)  SMEM scalar table: depthwise then pointwise w.
    b_ref: (Cout, 1)          fused bias (pw @ dw_bias + pw_bias), f32 (VMEM).
    o_ref: (1, Cout, TH*Wo)   lane-dense output tile  (or (1, Cout, TH, Wo)).
    """
    cin = x_ref.shape[1]
    cout = b_ref.shape[0]
    pw_off = cin * K * K

    h = pl.program_id(1)
    base = pl.multiple_of(h * TH * stride, TH * stride)

    outs = [None] * cout                      # per-output-channel f32 accumulators
    for ci in range(cin):                     # static unroll (small-channel regime)
        acc = jnp.zeros((TH, Wo), jnp.float32)
        if stride == 1:
            # One aligned (TH+K-1, Wp) band load per channel; (ki, kj) taps are
            # static sublane/lane slices of the in-register band.
            band = x_ref[0, ci, pl.ds(base, TH + K - 1), :].astype(jnp.float32)
            for ki in range(K):
                for kj in range(K):
                    w = p_ref[ci * K * K + ki * K + kj]          # SMEM scalar
                    acc = acc + band[ki:ki + TH, kj:kj + Wo] * w
        else:
            for ki in range(K):
                # One sublane-strided band per (ci, ki, lane-phase); kj taps are
                # contiguous static slices of the decimated phase bands.
                nph = min(stride, K)
                phases = []
                for r in range(nph):
                    q_max = (K - 1 - r) // stride
                    phases.append(
                        x_ref[0, ci, pl.ds(base + ki, TH, stride),
                              pl.ds(r, q_max + Wo, stride)].astype(jnp.float32))
                for kj in range(K):
                    w = p_ref[ci * K * K + ki * K + kj]
                    r, q = kj % stride, kj // stride
                    acc = acc + phases[r][:, q:q + Wo] * w

        # Pointwise 1x1 conv fused as scalar*tile VPU FMAs (toy channel counts).
        # TODO(synk): for Cin/Cout >= ~32, accumulate the depthwise result into a
        # (TH*Wo, Cin) VMEM scratch and run the pointwise as an MXU matmul.
        for co in range(cout):
            contrib = acc * p_ref[pw_off + co * cin + ci]
            outs[co] = contrib if outs[co] is None else outs[co] + contrib

    # Single merged store; fused bias added as one broadcast vector.
    stacked = jnp.stack(outs, axis=0)                        # (Cout, TH, Wo) f32
    if flatten_out:
        res = stacked.reshape(cout, TH * Wo) + b_ref[...]    # lane-dense
    else:
        res = stacked + b_ref[...].reshape(cout, 1, 1)       # Wo >= 128: W on lanes
    o_ref[0] = res.astype(o_ref.dtype)


def _pick_row_tile(Ho, Wo, Cin, Cout, Hp, Wp, itemsize, flatten_out):
    """Output-row tile height TH (divides Ho)."""
    # Overhead-bound regime: whole image per step (grid = (N, 1)).
    if (Cin * Hp * Wp + Cout * Ho * Wo) * itemsize <= (2 << 20):
        return Ho

    def ok(th):
        if Ho % th != 0:
            return False
        if th == Ho:
            return True
        return (th * Wo) % 128 == 0 if flatten_out else th % 8 == 0

    # Keep the Cout f32 accumulators (TH*Wo elems each) + band loads modest.
    budget = max(1024, (128 * 1024) // max(Cout, 1))
    cands = [d for d in range(1, Ho + 1) if ok(d) and d * Wo <= budget]
    return max(cands) if cands else Ho


def depthwise_separable_conv2d(x_nchw, dw_w, dw_b, pw_w, pw_b, *, stride, padding):
    """Matches torch: Conv2d(Cin,Cin,K,stride,padding,groups=Cin) -> Conv2d(Cin,Cout,1).

    x_nchw: (N, Cin, H, W)
    dw_w  : (Cin, 1, K, K)    dw_b: (Cin,)
    pw_w  : (Cout, Cin, 1, 1) pw_b: (Cout,)
    returns (N, Cout, Ho, Wo)
    """
    N, Cin, H, W = x_nchw.shape
    K = dw_w.shape[-1]
    Cout = pw_w.shape[0]
    Ho = (H + 2 * padding - K) // stride + 1
    Wo = (W + 2 * padding - K) // stride + 1
    Hp, Wp = H + 2 * padding, W + 2 * padding
    itemsize = x_nchw.dtype.itemsize

    # NCHW-native: only wrapper glue is the spatial zero padding.
    xp = jnp.pad(x_nchw, ((0, 0), (0, 0), (padding, padding), (padding, padding)))

    f32 = jnp.float32
    dw_flat = dw_w[:, 0, :, :].astype(f32).reshape(Cin * K * K)
    pw_mat = pw_w[:, :, 0, 0].astype(f32)                        # (Cout, Cin)
    # Pointwise conv is linear -> fold the depthwise bias into its bias (exact).
    b_fused = (pw_mat @ dw_b.astype(f32) + pw_b.astype(f32)).reshape(Cout, 1)
    params = jnp.concatenate([dw_flat, pw_mat.reshape(Cout * Cin)])

    flatten_out = Wo < 128                    # keep W on lanes only when Wo >= 128
    TH = _pick_row_tile(Ho, Wo, Cin, Cout, Hp, Wp, itemsize, flatten_out)
    assert Ho % TH == 0
    n_row_tiles = Ho // TH

    kernel = functools.partial(_dwsep_kernel, K=K, stride=stride, TH=TH, Wo=Wo,
                               flatten_out=flatten_out)

    in_block_bytes = Cin * Hp * Wp * itemsize
    out_block_bytes = Cout * TH * Wo * itemsize
    # v7x guard: the whole-image block is double-buffered by the pipeline;
    # single-buffer it before it crowds the 32 MiB scoped-VMEM default.
    big_input = in_block_bytes > (12 << 20)
    x_spec_kwargs = dict(pipeline_mode=pl.Buffered(1)) if big_input else {}
    # TODO(synk): above ~24 MiB per padded image, switch the input to a
    # row-band-with-halo fetched via memory_space=pl.ANY + manual
    # make_async_copy double buffering (halo not expressible as a block index_map).
    x_spec = pl.BlockSpec((1, Cin, Hp, Wp), lambda n, h: (n, 0, 0, 0),
                          **x_spec_kwargs)

    if flatten_out:
        out_shape = jax.ShapeDtypeStruct((N, Cout, Ho * Wo), x_nchw.dtype)
        out_spec = pl.BlockSpec((1, Cout, TH * Wo), lambda n, h: (n, 0, h))
    else:
        out_shape = jax.ShapeDtypeStruct((N, Cout, Ho, Wo), x_nchw.dtype)
        out_spec = pl.BlockSpec((1, Cout, TH, Wo), lambda n, h: (n, 0, h, 0))

    bufs = 1 if big_input else 2
    vmem_limit = int(min(max(bufs * in_block_bytes + 2 * out_block_bytes + (2 << 20),
                             8 << 20), 30 << 20))

    out = pl.pallas_call(
        kernel,
        out_shape=out_shape,
        grid_spec=pltpu.PrefetchScalarGridSpec(
            num_scalar_prefetch=0,
            grid=(N, n_row_tiles),
            in_specs=[
                x_spec,                                                 # padded image
                pl.BlockSpec(memory_space=pltpu.MemorySpace.SMEM),      # conv weights
                pl.BlockSpec((Cout, 1), lambda n, h: (0, 0)),           # fused bias
            ],
            out_specs=out_spec,
        ),
        compiler_params=pltpu.CompilerParams(
            dimension_semantics=("parallel", "parallel"),
            vmem_limit_bytes=vmem_limit,
        ),
    )(xp, params, b_fused)

    if flatten_out:
        out = out.reshape(N, Cout, Ho, Wo)    # bitwise no-op for row-major NCHW
    return out


def _reference(x_nchw, dw_w, dw_b, pw_w, pw_b, *, stride, padding):
    """Pure-JAX reference (mirrors torch Conv2d semantics)."""
    cin = x_nchw.shape[1]
    dn = jax.lax.conv_dimension_numbers(x_nchw.shape, dw_w.shape,
                                        ("NCHW", "OIHW", "NCHW"))
    y = jax.lax.conv_general_dilated(
        x_nchw, dw_w, window_strides=(stride, stride),
        padding=((padding, padding), (padding, padding)),
        dimension_numbers=dn, feature_group_count=cin,
        precision=jax.lax.Precision.HIGHEST)
    y = y + dw_b.reshape(1, -1, 1, 1)
    dn2 = jax.lax.conv_dimension_numbers(y.shape, pw_w.shape,
                                         ("NCHW", "OIHW", "NCHW"))
    z = jax.lax.conv_general_dilated(
        y, pw_w, window_strides=(1, 1), padding=((0, 0), (0, 0)),
        dimension_numbers=dn2, precision=jax.lax.Precision.HIGHEST)
    return z + pw_b.reshape(1, -1, 1, 1)


if __name__ == "__main__":
    # Small, deterministic config consistent with the module's __init__.
    N, Cin, H, W = 2, 4, 16, 16
    Cout, K, stride, padding = 8, 3, 1, 1

    key = jax.random.PRNGKey(0)
    kx, k1, k2, k3, k4 = jax.random.split(key, 5)
    x = jax.random.normal(kx, (N, Cin, H, W), jnp.float32)
    dw_w = 0.1 * jax.random.normal(k1, (Cin, 1, K, K), jnp.float32)
    dw_b = 0.1 * jax.random.normal(k2, (Cin,), jnp.float32)
    pw_w = 0.1 * jax.random.normal(k3, (Cout, Cin, 1, 1), jnp.float32)
    pw_b = 0.1 * jax.random.normal(k4, (Cout,), jnp.float32)

    out = depthwise_separable_conv2d(x, dw_w, dw_b, pw_w, pw_b,
                                     stride=stride, padding=padding)
    out = jax.block_until_ready(out)

    ref = _reference(x, dw_w, dw_b, pw_w, pw_b, stride=stride, padding=padding)
    assert out.shape == ref.shape == (N, Cout, H, W), (out.shape, ref.shape)
    assert jnp.allclose(out, ref, atol=1e-5, rtol=1e-5), \
        float(jnp.max(jnp.abs(out - ref)))

    print("KERNEL_OK")
</pallas_src>

<mosaic_0001>
module attributes {stable_mosaic.version = 11 : i64} {
  func.func @_dwsep_kernel(%arg0: i32, %arg1: i32, %arg2: memref<1x4x18x18xf32, #tpu.memory_space<vmem>>, %arg3: memref<68xf32, #tpu.memory_space<smem>>, %arg4: memref<8x1xf32, #tpu.memory_space<vmem>>, %arg5: memref<1x8x256xf32, #tpu.memory_space<vmem>>) attributes {dimension_semantics = [#tpu.dimension_semantics<parallel>, #tpu.dimension_semantics<parallel>], iteration_bounds = array<i64: 2, 1>, scalar_prefetch = 0 : i64, scratch_operands = 0 : i64, tpu.core_type = #tpu.core_type<tc>, window_params = [{transform_indices = @transform_0, window_bounds = array<i64: 1, 4, 18, 18>}, {transform_indices = @transform_1, window_bounds = array<i64: 68>}, {pipeline_mode = #tpu.pipeline_mode<synchronous>, transform_indices = @transform_2, window_bounds = array<i64: 8, 1>}, {transform_indices = @transform_3, window_bounds = array<i64: 1, 8, 256>}]} {
    %c16_i32 = arith.constant 16 : i32
    %0 = arith.muli %arg1, %c16_i32 : i32
    %c1_i32 = arith.constant 1 : i32
    %1 = arith.muli %0, %c1_i32 : i32
    %2 = tpu.assume_multiple %1, 16 : i32
    %cst = arith.constant 0.000000e+00 : f32
    %3 = vector.broadcast %cst : f32 to vector<16x16xf32>
    %c0 = arith.constant 0 : index
    %c0_0 = arith.constant 0 : index
    %4 = arith.index_cast %2 : i32 to index
    %c0_1 = arith.constant 0 : index
    %5 = vector.load %arg2[%c0, %c0_0, %4, %c0_1] : memref<1x4x18x18xf32, #tpu.memory_space<vmem>>, vector<1x1x18x18xf32>
    %6 = vector.shape_cast %5 : vector<1x1x18x18xf32> to vector<18x18xf32>
    %c0_2 = arith.constant 0 : index
    %7 = memref.load %arg3[%c0_2] : memref<68xf32, #tpu.memory_space<smem>>
    %8 = vector.extract_strided_slice %6 {offsets = [0, 0], sizes = [16, 16], strides = [1, 1]} : vector<18x18xf32> to vector<16x16xf32>
    %9 = vector.broadcast %7 : f32 to vector<16x16xf32>
    %10 = arith.mulf %8, %9 : vector<16x16xf32>
    %11 = arith.addf %3, %10 : vector<16x16xf32>
    %c1 = arith.constant 1 : index
    %12 = memref.load %arg3[%c1] : memref<68xf32, #tpu.memory_space<smem>>
    %13 = vector.extract_strided_slice %6 {offsets = [0, 1], sizes = [16, 16], strides = [1, 1]} : vector<18x18xf32> to vector<16x16xf32>
    %14 = vector.broadcast %12 : f32 to vector<16x16xf32>
    %15 = arith.mulf %13, %14 : vector<16x16xf32>
    %16 = arith.addf %11, %15 : vector<16x16xf32>
    %c2 = arith.constant 2 : index
    %17 = memref.load %arg3[%c2] : memref<68xf32, #tpu.memory_space<smem>>
    %18 = vector.extract_strided_slice %6 {offsets = [0, 2], sizes = [16, 16], strides = [1, 1]} : vector<18x18xf32> to vector<16x16xf32>
    %19 = vector.broadcast %17 : f32 to vector<16x16xf32>
    %20 = arith.mulf %18, %19 : vector<16x16xf32>
    %21 = arith.addf %16, %20 : vector<16x16xf32>
    %c3 = arith.constant 3 : index
    %22 = memref.load %arg3[%c3] : memref<68xf32, #tpu.memory_space<smem>>
    %23 = vector.extract_strided_slice %6 {offsets = [1, 0], sizes = [16, 16], strides = [1, 1]} : vector<18x18xf32> to vector<16x16xf32>
    %24 = vector.broadcast %22 : f32 to vector<16x16xf32>
    %25 = arith.mulf %23, %24 : vector<16x16xf32>
    %26 = arith.addf %21, %25 : vector<16x16xf32>
    %c4 = arith.constant 4 : index
    %27 = memref.load %arg3[%c4] : memref<68xf32, #tpu.memory_space<smem>>
    %28 = vector.extract_strided_slice %6 {offsets = [1, 1], sizes = [16, 16], strides = [1, 1]} : vector<18x18xf32> to vector<16x16xf32>
    %29 = vector.broadcast %27 : f32 to vector<16x16xf32>
    %30 = arith.mulf %28, %29 : vector<16x16xf32>
    %31 = arith.addf %26, %30 : vector<16x16xf32>
    %c5 = arith.constant 5 : index
    %32 = memref.load %arg3[%c5] : memref<68xf32, #tpu.memory_space<smem>>
    %33 = vector.extract_strided_slice %6 {offsets = [1, 2], sizes = [16, 16], strides = [1, 1]} : vector<18x18xf32> to vector<16x16xf32>
    %34 = vector.broadcast %32 : f32 to vector<16x16xf32>
    %35 = arith.mulf %33, %34 : vector<16x16xf32>
    %36 = arith.addf %31, %35 : vector<16x16xf32>
    %c6 = arith.constant 6 : index
    %37 = memref.load %arg3[%c6] : memref<68xf32, #tpu.memory_space<smem>>
    %38 = vector.extract_strided_slice %6 {offsets = [2, 0], sizes = [16, 16], strides = [1, 1]} : vector<18x18xf32> to vector<16x16xf32>
    %39 = vector.broadcast %37 : f32 to vector<16x16xf32>
    %40 = arith.mulf %38, %39 : vector<16x16xf32>
    %41 = arith.addf %36, %40 : vector<16x16xf32>
    %c7 = arith.constant 7 : index
    %42 = memref.load %arg3[%c7] : memref<68xf32, #tpu.memory_space<smem>>
    %43 = vector.extract_strided_slice %6 {offsets = [2, 1], sizes = [16, 16], strides = [1, 1]} : vector<18x18xf32> to vector<16x16xf32>
    %44 = vector.broadcast %42 : f32 to vector<16x16xf32>
    %45 = arith.mulf %43, %44 : vector<16x16xf32>
    %46 = arith.addf %41, %45 : vector<16x16xf32>
    %c8 = arith.constant 8 : index
    %47 = memref.load %arg3[%c8] : memref<68xf32, #tpu.memory_space<smem>>
    %48 = vector.extract_strided_slice %6 {offsets = [2, 2], sizes = [16, 16], strides = [1, 1]} : vector<18x18xf32> to vector<16x16xf32>
    %49 = vector.broadcast %47 : f32 to vector<16x16xf32>
    %50 = arith.mulf %48, %49 : vector<16x16xf32>
    %51 = arith.addf %46, %50 : vector<16x16xf32>
    %c36 = arith.constant 36 : index
    %52 = memref.load %arg3[%c36] : memref<68xf32, #tpu.memory_space<smem>>
    %53 = vector.broadcast %52 : f32 to vector<16x16xf32>
    %54 = arith.mulf %51, %53 : vector<16x16xf32>
    %c40 = arith.constant 40 : index
    %55 = memref.load %arg3[%c40] : memref<68xf32, #tpu.memory_space<smem>>
    %56 = vector.broadcast %55 : f32 to vector<16x16xf32>
    %57 = arith.mulf %51, %56 : vector<16x16xf32>
    %c44 = arith.constant 44 : index
    %58 = memref.load %arg3[%c44] : memref<68xf32, #tpu.memory_space<smem>>
    %59 = vector.broadcast %58 : f32 to vector<16x16xf32>
    %60 = arith.mulf %51, %59 : vector<16x16xf32>
    %c48 = arith.constant 48 : index
    %61 = memref.load %arg3[%c48] : memref<68xf32, #tpu.memory_space<smem>>
    %62 = vector.broadcast %61 : f32 to vector<16x16xf32>
    %63 = arith.mulf %51, %62 : vector<16x16xf32>
    %c52 = arith.constant 52 : index
    %64 = memref.load %arg3[%c52] : memref<68xf32, #tpu.memory_space<smem>>
    %65 = vector.broadcast %64 : f32 to vector<16x16xf32>
    %66 = arith.mulf %51, %65 : vector<16x16xf32>
    %c56 = arith.constant 56 : index
    %67 = memref.load %arg3[%c56] : memref<68xf32, #tpu.memory_space<smem>>
    %68 = vector.broadcast %67 : f32 to vector<16x16xf32>
    %69 = arith.mulf %51, %68 : vector<16x16xf32>
    %c60 = arith.constant 60 : index
    %70 = memref.load %arg3[%c60] : memref<68xf32, #tpu.memory_space<smem>>
    %71 = vector.broadcast %70 : f32 to vector<16x16xf32>
    %72 = arith.mulf %51, %71 : vector<16x16xf32>
    %c64 = arith.constant 64 : index
    %73 = memref.load %arg3[%c64] : memref<68xf32, #tpu.memory_space<smem>>
    %74 = vector.broadcast %73 : f32 to vector<16x16xf32>
    %75 = arith.mulf %51, %74 : vector<16x16xf32>
    %cst_3 = arith.constant 0.000000e+00 : f32
    %76 = vector.broadcast %cst_3 : f32 to vector<16x16xf32>
    %c0_4 = arith.constant 0 : index
    %c1_5 = arith.constant 1 : index
    %77 = arith.index_cast %2 : i32 to index
    %c0_6 = arith.constant 0 : index
    %78 = vector.load %arg2[%c0_4, %c1_5, %77, %c0_6] : memref<1x4x18x18xf32, #tpu.memory_space<vmem>>, vector<1x1x18x18xf32>
    %79 = vector.shape_cast %78 : vector<1x1x18x18xf32> to vector<18x18xf32>
    %c9 = arith.constant 9 : index
    %80 = memref.load %arg3[%c9] : memref<68xf32, #tpu.memory_space<smem>>
    %81 = vector.extract_strided_slice %79 {offsets = [0, 0], sizes = [16, 16], strides = [1, 1]} : vector<18x18xf32> to vector<16x16xf32>
    %82 = vector.broadcast %80 : f32 to vector<16x16xf32>
    %83 = arith.mulf %81, %82 : vector<16x16xf32>
    %84 = arith.addf %76, %83 : vector<16x16xf32>
    %c10 = arith.constant 10 : index
    %85 = memref.load %arg3[%c10] : memref<68xf32, #tpu.memory_space<smem>>
    %86 = vector.extract_strided_slice %79 {offsets = [0, 1], sizes = [16, 16], strides = [1, 1]} : vector<18x18xf32> to vector<16x16xf32>
    %87 = vector.broadcast %85 : f32 to vector<16x16xf32>
    %88 = arith.mulf %86, %87 : vector<16x16xf32>
    %89 = arith.addf %84, %88 : vector<16x16xf32>
    %c11 = arith.constant 11 : index
    %90 = memref.load %arg3[%c11] : memref<68xf32, #tpu.memory_space<smem>>
    %91 = vector.extract_strided_slice %79 {offsets = [0, 2], sizes = [16, 16], strides = [1, 1]} : vector<18x18xf32> to vector<16x16xf32>
    %92 = vector.broadcast %90 : f32 to vector<16x16xf32>
    %93 = arith.mulf %91, %92 : vector<16x16xf32>
    %94 = arith.addf %89, %93 : vector<16x16xf32>
    %c12 = arith.constant 12 : index
    %95 = memref.load %arg3[%c12] : memref<68xf32, #tpu.memory_space<smem>>
    %96 = vector.extract_strided_slice %79 {offsets = [1, 0], sizes = [16, 16], strides = [1, 1]} : vector<18x18xf32> to vector<16x16xf32>
    %97 = vector.broadcast %95 : f32 to vector<16x16xf32>
    %98 = arith.mulf %96, %97 : vector<16x16xf32>
    %99 = arith.addf %94, %98 : vector<16x16xf32>
    %c13 = arith.constant 13 : index
    %100 = memref.load %arg3[%c13] : memref<68xf32, #tpu.memory_space<smem>>
    %101 = vector.extract_strided_slice %79 {offsets = [1, 1], sizes = [16, 16], strides = [1, 1]} : vector<18x18xf32> to vector<16x16xf32>
    %102 = vector.broadcast %100 : f32 to vector<16x16xf32>
    %103 = arith.mulf %101, %102 : vector<16x16xf32>
    %104 = arith.addf %99, %103 : vector<16x16xf32>
    %c14 = arith.constant 14 : index
    %105 = memref.load %arg3[%c14] : memref<68xf32, #tpu.memory_space<smem>>
    %106 = vector.extract_strided_slice %79 {offsets = [1, 2], sizes = [16, 16], strides = [1, 1]} : vector<18x18xf32> to vector<16x16xf32>
    %107 = vector.broadcast %105 : f32 to vector<16x16xf32>
    %108 = arith.mulf %106, %107 : vector<16x16xf32>
    %109 = arith.addf %104, %108 : vector<16x16xf32>
    %c15 = arith.constant 15 : index
    %110 = memref.load %arg3[%c15] : memref<68xf32, #tpu.memory_space<smem>>
    %111 = vector.extract_strided_slice %79 {offsets = [2, 0], sizes = [16, 16], strides = [1, 1]} : vector<18x18xf32> to vector<16x16xf32>
    %112 = vector.broadcast %110 : f32 to vector<16x16xf32>
    %113 = arith.mulf %111, %112 : vector<16x16xf32>
    %114 = arith.addf %109, %113 : vector<16x16xf32>
    %c16 = arith.constant 16 : index
    %115 = memref.load %arg3[%c16] : memref<68xf32, #tpu.memory_space<smem>>
    %116 = vector.extract_strided_slice %79 {offsets = [2, 1], sizes = [16, 16], strides = [1, 1]} : vector<18x18xf32> to vector<16x16xf32>
    %117 = vector.broadcast %115 : f32 to vector<16x16xf32>
    %118 = arith.mulf %116, %117 : vector<16x16xf32>
    %119 = arith.addf %114, %118 : vector<16x16xf32>
    %c17 = arith.constant 17 : index
    %120 = memref.load %arg3[%c17] : memref<68xf32, #tpu.memory_space<smem>>
    %121 = vector.extract_strided_slice %79 {offsets = [2, 2], sizes = [16, 16], strides = [1, 1]} : vector<18x18xf32> to vector<16x16xf32>
    %122 = vector.broadcast %120 : f32 to vector<16x16xf32>
    %123 = arith.mulf %121, %122 : vector<16x16xf32>
    %124 = arith.addf %119, %123 : vector<16x16xf32>
    %c37 = arith.constant 37 : index
    %125 = memref.load %arg3[%c37] : memref<68xf32, #tpu.memory_space<smem>>
    %126 = vector.broadcast %125 : f32 to vector<16x16xf32>
    %127 = arith.mulf %124, %126 : vector<16x16xf32>
    %128 = arith.addf %54, %127 : vector<16x16xf32>
    %c41 = arith.constant 41 : index
    %129 = memref.load %arg3[%c41] : memref<68xf32, #tpu.memory_space<smem>>
    %130 = vector.broadcast %129 : f32 to vector<16x16xf32>
    %131 = arith.mulf %124, %130 : vector<16x16xf32>
    %132 = arith.addf %57, %131 : vector<16x16xf32>
    %c45 = arith.constant 45 : index
    %133 = memref.load %arg3[%c45] : memref<68xf32, #tpu.memory_space<smem>>
    %134 = vector.broadcast %133 : f32 to vector<16x16xf32>
    %135 = arith.mulf %124, %134 : vector<16x16xf32>
    %136 = arith.addf %60, %135 : vector<16x16xf32>
    %c49 = arith.constant 49 : index
    %137 = memref.load %arg3[%c49] : memref<68xf32, #tpu.memory_space<smem>>
    %138 = vector.broadcast %137 : f32 to vector<16x16xf32>
    %139 = arith.mulf %124, %138 : vector<16x16xf32>
    %140 = arith.addf %63, %139 : vector<16x16xf32>
    %c53 = arith.constant 53 : index
    %141 = memref.load %arg3[%c53] : memref<68xf32, #tpu.memory_space<smem>>
    %142 = vector.broadcast %141 : f32 to vector<16x16xf32>
    %143 = arith.mulf %124, %142 : vector<16x16xf32>
    %144 = arith.addf %66, %143 : vector<16x16xf32>
    %c57 = arith.constant 57 : index
    %145 = memref.load %arg3[%c57] : memref<68xf32, #tpu.memory_space<smem>>
    %146 = vector.broadcast %145 : f32 to vector<16x16xf32>
    %147 = arith.mulf %124, %146 : vector<16x16xf32>
    %148 = arith.addf %69, %147 : vector<16x16xf32>
    %c61 = arith.constant 61 : index
    %149 = memref.load %arg3[%c61] : memref<68xf32, #tpu.memory_space<smem>>
    %150 = vector.broadcast %149 : f32 to vector<16x16xf32>
    %151 = arith.mulf %124, %150 : vector<16x16xf32>
    %152 = arith.addf %72, %151 : vector<16x16xf32>
    %c65 = arith.constant 65 : index
    %153 = memref.load %arg3[%c65] : memref<68xf32, #tpu.memory_space<smem>>
    %154 = vector.broadcast %153 : f32 to vector<16x16xf32>
    %155 = arith.mulf %124, %154 : vector<16x16xf32>
    %156 = arith.addf %75, %155 : vector<16x16xf32>
    %cst_7 = arith.constant 0.000000e+00 : f32
    %157 = vector.broadcast %cst_7 : f32 to vector<16x16xf32>
    %c0_8 = arith.constant 0 : index
    %c2_9 = arith.constant 2 : index
    %158 = arith.index_cast %2 : i32 to index
    %c0_10 = arith.constant 0 : index
    %159 = vector.load %arg2[%c0_8, %c2_9, %158, %c0_10] : memref<1x4x18x18xf32, #tpu.memory_space<vmem>>, vector<1x1x18x18xf32>
    %160 = vector.shape_cast %159 : vector<1x1x18x18xf32> to vector<18x18xf32>
    %c18 = arith.constant 18 : index
    %161 = memref.load %arg3[%c18] : memref<68xf32, #tpu.memory_space<smem>>
    %162 = vector.extract_strided_slice %160 {offsets = [0, 0], sizes = [16, 16], strides = [1, 1]} : vector<18x18xf32> to vector<16x16xf32>
    %163 = vector.broadcast %161 : f32 to vector<16x16xf32>
    %164 = arith.mulf %162, %163 : vector<16x16xf32>
    %165 = arith.addf %157, %164 : vector<16x16xf32>
    %c19 = arith.constant 19 : index
    %166 = memref.load %arg3[%c19] : memref<68xf32, #tpu.memory_space<smem>>
    %167 = vector.extract_strided_slice %160 {offsets = [0, 1], sizes = [16, 16], strides = [1, 1]} : vector<18x18xf32> to vector<16x16xf32>
    %168 = vector.broadcast %166 : f32 to vector<16x16xf32>
    %169 = arith.mulf %167, %168 : vector<16x16xf32>
    %170 = arith.addf %165, %169 : vector<16x16xf32>
    %c20 = arith.constant 20 : index
    %171 = memref.load %arg3[%c20] : memref<68xf32, #tpu.memory_space<smem>>
    %172 = vector.extract_strided_slice %160 {offsets = [0, 2], sizes = [16, 16], strides = [1, 1]} : vector<18x18xf32> to vector<16x16xf32>
    %173 = vector.broadcast %171 : f32 to vector<16x16xf32>
    %174 = arith.mulf %172, %173 : vector<16x16xf32>
    %175 = arith.addf %170, %174 : vector<16x16xf32>
    %c21 = arith.constant 21 : index
    %176 = memref.load %arg3[%c21] : memref<68xf32, #tpu.memory_space<smem>>
    %177 = vector.extract_strided_slice %160 {offsets = [1, 0], sizes = [16, 16], strides = [1, 1]} : vector<18x18xf32> to vector<16x16xf32>
    %178 = vector.broadcast %176 : f32 to vector<16x16xf32>
    %179 = arith.mulf %177, %178 : vector<16x16xf32>
    %180 = arith.addf %175, %179 : vector<16x16xf32>
    %c22 = arith.constant 22 : index
    %181 = memref.load %arg3[%c22] : memref<68xf32, #tpu.memory_space<smem>>
    %182 = vector.extract_strided_slice %160 {offsets = [1, 1], sizes = [16, 16], strides = [1, 1]} : vector<18x18xf32> to vector<16x16xf32>
    %183 = vector.broadcast %181 : f32 to vector<16x16xf32>
    %184 = arith.mulf %182, %183 : vector<16x16xf32>
    %185 = arith.addf %180, %184 : vector<16x16xf32>
    %c23 = arith.constant 23 : index
    %186 = memref.load %arg3[%c23] : memref<68xf32, #tpu.memory_space<smem>>
    %187 = vector.extract_strided_slice %160 {offsets = [1, 2], sizes = [16, 16], strides = [1, 1]} : vector<18x18xf32> to vector<16x16xf32>
    %188 = vector.broadcast %186 : f32 to vector<16x16xf32>
    %189 = arith.mulf %187, %188 : vector<16x16xf32>
    %190 = arith.addf %185, %189 : vector<16x16xf32>
    %c24 = arith.constant 24 : index
    %191 = memref.load %arg3[%c24] : memref<68xf32, #tpu.memory_space<smem>>
    %192 = vector.extract_strided_slice %160 {offsets = [2, 0], sizes = [16, 16], strides = [1, 1]} : vector<18x18xf32> to vector<16x16xf32>
    %193 = vector.broadcast %191 : f32 to vector<16x16xf32>
    %194 = arith.mulf %192, %193 : vector<16x16xf32>
    %195 = arith.addf %190, %194 : vector<16x16xf32>
    %c25 = arith.constant 25 : index
    %196 = memref.load %arg3[%c25] : memref<68xf32, #tpu.memory_space<smem>>
    %197 = vector.extract_strided_slice %160 {offsets = [2, 1], sizes = [16, 16], strides = [1, 1]} : vector<18x18xf32> to vector<16x16xf32>
    %198 = vector.broadcast %196 : f32 to vector<16x16xf32>
    %199 = arith.mulf %197, %198 : vector<16x16xf32>
    %200 = arith.addf %195, %199 : vector<16x16xf32>
    %c26 = arith.constant 26 : index
    %201 = memref.load %arg3[%c26] : memref<68xf32, #tpu.memory_space<smem>>
    %202 = vector.extract_strided_slice %160 {offsets = [2, 2], sizes = [16, 16], strides = [1, 1]} : vector<18x18xf32> to vector<16x16xf32>
    %203 = vector.broadcast %201 : f32 to vector<16x16xf32>
    %204 = arith.mulf %202, %203 : vector<16x16xf32>
    %205 = arith.addf %200, %204 : vector<16x16xf32>
    %c38 = arith.constant 38 : index
    %206 = memref.load %arg3[%c38] : memref<68xf32, #tpu.memory_space<smem>>
    %207 = vector.broadcast %206 : f32 to vector<16x16xf32>
    %208 = arith.mulf %205, %207 : vector<16x16xf32>
    %209 = arith.addf %128, %208 : vector<16x16xf32>
    %c42 = arith.constant 42 : index
    %210 = memref.load %arg3[%c42] : memref<68xf32, #tpu.memory_space<smem>>
    %211 = vector.broadcast %210 : f32 to vector<16x16xf32>
    %212 = arith.mulf %205, %211 : vector<16x16xf32>
    %213 = arith.addf %132, %212 : vector<16x16xf32>
    %c46 = arith.constant 46 : index
    %214 = memref.load %arg3[%c46] : memref<68xf32, #tpu.memory_space<smem>>
    %215 = vector.broadcast %214 : f32 to vector<16x16xf32>
    %216 = arith.mulf %205, %215 : vector<16x16xf32>
    %217 = arith.addf %136, %216 : vector<16x16xf32>
    %c50 = arith.constant 50 : index
    %218 = memref.load %arg3[%c50] : memref<68xf32, #tpu.memory_space<smem>>
    %219 = vector.broadcast %218 : f32 to vector<16x16xf32>
    %220 = arith.mulf %205, %219 : vector<16x16xf32>
    %221 = arith.addf %140, %220 : vector<16x16xf32>
    %c54 = arith.constant 54 : index
    %222 = memref.load %arg3[%c54] : memref<68xf32, #tpu.memory_space<smem>>
    %223 = vector.broadcast %222 : f32 to vector<16x16xf32>
    %224 = arith.mulf %205, %223 : vector<16x16xf32>
    %225 = arith.addf %144, %224 : vector<16x16xf32>
    %c58 = arith.constant 58 : index
    %226 = memref.load %arg3[%c58] : memref<68xf32, #tpu.memory_space<smem>>
    %227 = vector.broadcast %226 : f32 to vector<16x16xf32>
    %228 = arith.mulf %205, %227 : vector<16x16xf32>
    %229 = arith.addf %148, %228 : vector<16x16xf32>
    %c62 = arith.constant 62 : index
    %230 = memref.load %arg3[%c62] : memref<68xf32, #tpu.memory_space<smem>>
    %231 = vector.broadcast %230 : f32 to vector<16x16xf32>
    %232 = arith.mulf %205, %231 : vector<16x16xf32>
    %233 = arith.addf %152, %232 : vector<16x16xf32>
    %c66 = arith.constant 66 : index
    %234 = memref.load %arg3[%c66] : memref<68xf32, #tpu.memory_space<smem>>
    %235 = vector.broadcast %234 : f32 to vector<16x16xf32>
    %236 = arith.mulf %205, %235 : vector<16x16xf32>
    %237 = arith.addf %156, %236 : vector<16x16xf32>
    %cst_11 = arith.constant 0.000000e+00 : f32
    %238 = vector.broadcast %cst_11 : f32 to vector<16x16xf32>
    %c0_12 = arith.constant 0 : index
    %c3_13 = arith.constant 3 : index
    %239 = arith.index_cast %2 : i32 to index
    %c0_14 = arith.constant 0 : index
    %240 = vector.load %arg2[%c0_12, %c3_13, %239, %c0_14] : memref<1x4x18x18xf32, #tpu.memory_space<vmem>>, vector<1x1x18x18xf32>
    %241 = vector.shape_cast %240 : vector<1x1x18x18xf32> to vector<18x18xf32>
    %c27 = arith.constant 27 : index
    %242 = memref.load %arg3[%c27] : memref<68xf32, #tpu.memory_space<smem>>
    %243 = vector.extract_strided_slice %241 {offsets = [0, 0], sizes = [16, 16], strides = [1, 1]} : vector<18x18xf32> to vector<16x16xf32>
    %244 = vector.broadcast %242 : f32 to vector<16x16xf32>
    %245 = arith.mulf %243, %244 : vector<16x16xf32>
    %246 = arith.addf %238, %245 : vector<16x16xf32>
    %c28 = arith.constant 28 : index
    %247 = memref.load %arg3[%c28] : memref<68xf32, #tpu.memory_space<smem>>
    %248 = vector.extract_strided_slice %241 {offsets = [0, 1], sizes = [16, 16], strides = [1, 1]} : vector<18x18xf32> to vector<16x16xf32>
    %249 = vector.broadcast %247 : f32 to vector<16x16xf32>
    %250 = arith.mulf %248, %249 : vector<16x16xf32>
    %251 = arith.addf %246, %250 : vector<16x16xf32>
    %c29 = arith.constant 29 : index
    %252 = memref.load %arg3[%c29] : memref<68xf32, #tpu.memory_space<smem>>
    %253 = vector.extract_strided_slice %241 {offsets = [0, 2], sizes = [16, 16], strides = [1, 1]} : vector<18x18xf32> to vector<16x16xf32>
    %254 = vector.broadcast %252 : f32 to vector<16x16xf32>
    %255 = arith.mulf %253, %254 : vector<16x16xf32>
    %256 = arith.addf %251, %255 : vector<16x16xf32>
    %c30 = arith.constant 30 : index
    %257 = memref.load %arg3[%c30] : memref<68xf32, #tpu.memory_space<smem>>
    %258 = vector.extract_strided_slice %241 {offsets = [1, 0], sizes = [16, 16], strides = [1, 1]} : vector<18x18xf32> to vector<16x16xf32>
    %259 = vector.broadcast %257 : f32 to vector<16x16xf32>
    %260 = arith.mulf %258, %259 : vector<16x16xf32>
    %261 = arith.addf %256, %260 : vector<16x16xf32>
    %c31 = arith.constant 31 : index
    %262 = memref.load %arg3[%c31] : memref<68xf32, #tpu.memory_space<smem>>
    %263 = vector.extract_strided_slice %241 {offsets = [1, 1], sizes = [16, 16], strides = [1, 1]} : vector<18x18xf32> to vector<16x16xf32>
    %264 = vector.broadcast %262 : f32 to vector<16x16xf32>
    %265 = arith.mulf %263, %264 : vector<16x16xf32>
    %266 = arith.addf %261, %265 : vector<16x16xf32>
    %c32 = arith.constant 32 : index
    %267 = memref.load %arg3[%c32] : memref<68xf32, #tpu.memory_space<smem>>
    %268 = vector.extract_strided_slice %241 {offsets = [1, 2], sizes = [16, 16], strides = [1, 1]} : vector<18x18xf32> to vector<16x16xf32>
    %269 = vector.broadcast %267 : f32 to vector<16x16xf32>
    %270 = arith.mulf %268, %269 : vector<16x16xf32>
    %271 = arith.addf %266, %270 : vector<16x16xf32>
    %c33 = arith.constant 33 : index
    %272 = memref.load %arg3[%c33] : memref<68xf32, #tpu.memory_space<smem>>
    %273 = vector.extract_strided_slice %241 {offsets = [2, 0], sizes = [16, 16], strides = [1, 1]} : vector<18x18xf32> to vector<16x16xf32>
    %274 = vector.broadcast %272 : f32 to vector<16x16xf32>
    %275 = arith.mulf %273, %274 : vector<16x16xf32>
    %276 = arith.addf %271, %275 : vector<16x16xf32>
    %c34 = arith.constant 34 : index
    %277 = memref.load %arg3[%c34] : memref<68xf32, #tpu.memory_space<smem>>
    %278 = vector.extract_strided_slice %241 {offsets = [2, 1], sizes = [16, 16], strides = [1, 1]} : vector<18x18xf32> to vector<16x16xf32>
    %279 = vector.broadcast %277 : f32 to vector<16x16xf32>
    %280 = arith.mulf %278, %279 : vector<16x16xf32>
    %281 = arith.addf %276, %280 : vector<16x16xf32>
    %c35 = arith.constant 35 : index
    %282 = memref.load %arg3[%c35] : memref<68xf32, #tpu.memory_space<smem>>
    %283 = vector.extract_strided_slice %241 {offsets = [2, 2], sizes = [16, 16], strides = [1, 1]} : vector<18x18xf32> to vector<16x16xf32>
    %284 = vector.broadcast %282 : f32 to vector<16x16xf32>
    %285 = arith.mulf %283, %284 : vector<16x16xf32>
    %286 = arith.addf %281, %285 : vector<16x16xf32>
    %c39 = arith.constant 39 : index
    %287 = memref.load %arg3[%c39] : memref<68xf32, #tpu.memory_space<smem>>
    %288 = vector.broadcast %287 : f32 to vector<16x16xf32>
    %289 = arith.mulf %286, %288 : vector<16x16xf32>
    %290 = arith.addf %209, %289 : vector<16x16xf32>
    %c43 = arith.constant 43 : index
    %291 = memref.load %arg3[%c43] : memref<68xf32, #tpu.memory_space<smem>>
    %292 = vector.broadcast %291 : f32 to vector<16x16xf32>
    %293 = arith.mulf %286, %292 : vector<16x16xf32>
    %294 = arith.addf %213, %293 : vector<16x16xf32>
    %c47 = arith.constant 47 : index
    %295 = memref.load %arg3[%c47] : memref<68xf32, #tpu.memory_space<smem>>
    %296 = vector.broadcast %295 : f32 to vector<16x16xf32>
    %297 = arith.mulf %286, %296 : vector<16x16xf32>
    %298 = arith.addf %217, %297 : vector<16x16xf32>
    %c51 = arith.constant 51 : index
    %299 = memref.load %arg3[%c51] : memref<68xf32, #tpu.memory_space<smem>>
    %300 = vector.broadcast %299 : f32 to vector<16x16xf32>
    %301 = arith.mulf %286, %300 : vector<16x16xf32>
    %302 = arith.addf %221, %301 : vector<16x16xf32>
    %c55 = arith.constant 55 : index
    %303 = memref.load %arg3[%c55] : memref<68xf32, #tpu.memory_space<smem>>
    %304 = vector.broadcast %303 : f32 to vector<16x16xf32>
    %305 = arith.mulf %286, %304 : vector<16x16xf32>
    %306 = arith.addf %225, %305 : vector<16x16xf32>
    %c59 = arith.constant 59 : index
    %307 = memref.load %arg3[%c59] : memref<68xf32, #tpu.memory_space<smem>>
    %308 = vector.broadcast %307 : f32 to vector<16x16xf32>
    %309 = arith.mulf %286, %308 : vector<16x16xf32>
    %310 = arith.addf %229, %309 : vector<16x16xf32>
    %c63 = arith.constant 63 : index
    %311 = memref.load %arg3[%c63] : memref<68xf32, #tpu.memory_space<smem>>
    %312 = vector.broadcast %311 : f32 to vector<16x16xf32>
    %313 = arith.mulf %286, %312 : vector<16x16xf32>
    %314 = arith.addf %233, %313 : vector<16x16xf32>
    %c67 = arith.constant 67 : index
    %315 = memref.load %arg3[%c67] : memref<68xf32, #tpu.memory_space<smem>>
    %316 = vector.broadcast %315 : f32 to vector<16x16xf32>
    %317 = arith.mulf %286, %316 : vector<16x16xf32>
    %318 = arith.addf %237, %317 : vector<16x16xf32>
    %319 = vector.shape_cast %290 : vector<16x16xf32> to vector<1x16x16xf32>
    %320 = vector.shape_cast %294 : vector<16x16xf32> to vector<1x16x16xf32>
    %321 = vector.shape_cast %298 : vector<16x16xf32> to vector<1x16x16xf32>
    %322 = vector.shape_cast %302 : vector<16x16xf32> to vector<1x16x16xf32>
    %323 = vector.shape_cast %306 : vector<16x16xf32> to vector<1x16x16xf32>
    %324 = vector.shape_cast %310 : vector<16x16xf32> to vector<1x16x16xf32>
    %325 = vector.shape_cast %314 : vector<16x16xf32> to vector<1x16x16xf32>
    %326 = vector.shape_cast %318 : vector<16x16xf32> to vector<1x16x16xf32>
    %327 = tpu.concatenate %319, %320, %321, %322, %323, %324, %325, %326 in 0 : vector<1x16x16xf32>, vector<1x16x16xf32>, vector<1x16x16xf32>, vector<1x16x16xf32>, vector<1x16x16xf32>, vector<1x16x16xf32>, vector<1x16x16xf32>, vector<1x16x16xf32> -> vector<8x16x16xf32>
    %328 = vector.shape_cast %327 : vector<8x16x16xf32> to vector<8x256xf32>
    %c0_15 = arith.constant 0 : index
    %c0_16 = arith.constant 0 : index
    %329 = vector.load %arg4[%c0_15, %c0_16] : memref<8x1xf32, #tpu.memory_space<vmem>>, vector<8x1xf32>
    %330 = vector.broadcast %329 : vector<8x1xf32> to vector<8x256xf32>
    %331 = arith.addf %328, %330 : vector<8x256xf32>
    %c0_17 = arith.constant 0 : index
    %c0_18 = arith.constant 0 : index
    %c0_19 = arith.constant 0 : index
    %332 = vector.load %arg5[%c0_17, %c0_18, %c0_19] : memref<1x8x256xf32, #tpu.memory_space<vmem>>, vector<1x8x256xf32>
    %333 = vector.shape_cast %332 : vector<1x8x256xf32> to vector<8x256xf32>
    %334 = vector.shape_cast %331 : vector<8x256xf32> to vector<1x8x256xf32>
    tpu.vector_store %arg5[%c0_17, %c0_18, %c0_19], %334 {strides = array<i32>} : memref<1x8x256xf32, #tpu.memory_space<vmem>>, vector<1x8x256xf32>,
    return
  }
  func.func @transform_0(%arg0: i32, %arg1: i32) -> (i32, i32, i32, i32) {
    %c0_i32 = arith.constant 0 : i32
    %c0_i32_0 = arith.constant 0 : i32
    %c0_i32_1 = arith.constant 0 : i32
    %c0_i32_2 = arith.constant 0 : i32
    return %arg0, %c0_i32, %c0_i32_0, %c0_i32_1 : i32, i32, i32, i32
  }
  func.func @transform_1(%arg0: i32, %arg1: i32) -> i32 {
    %c0_i32 = arith.constant 0 : i32
    %c0_i32_0 = arith.constant 0 : i32
    return %c0_i32 : i32
  }
  func.func @transform_2(%arg0: i32, %arg1: i32) -> (i32, i32) {
    %c0_i32 = arith.constant 0 : i32
    %c0_i32_0 = arith.constant 0 : i32
    %c0_i32_1 = arith.constant 0 : i32
    return %c0_i32, %c0_i32_0 : i32, i32
  }
  func.func @transform_3(%arg0: i32, %arg1: i32) -> (i32, i32, i32) {
    %c0_i32 = arith.constant 0 : i32
    %c0_i32_0 = arith.constant 0 : i32
    return %arg0, %c0_i32, %arg1 : i32, i32, i32
  }
}

</mosaic_0001>

<bundles_post_ra>
// kernel: tpu_custom_call.1
= control target key start
LH: loop header
LB: loop body
LE: loop exit
PB: predicated region body
PF: predicated region fallthrough
CT: control target
= control target key end

     0   :  { %s2779_s0 = inlined_call_operand.vmem [shape: f32[2,4,18,18], index: 0, kind: input, shape index: {}]   ;;  %s2780_s1 = inlined_call_operand.vmem [shape: f32[68], index: 1, kind: input, shape index: {}]   ;;  %s2781_s2 = inlined_call_operand.vmem [shape: f32[8,1], index: 2, kind: input, shape index: {}]   ;;  %s2782_s3 = inlined_call_operand.hbm [shape: f32[2,8,256], index: 3, kind: output, shape index: {}]  }
   0x1   :  { %2801 = sst [smem:[#allocation20_spill]] %s2779_s0 }
   0x2   :  { %2802 = sst [smem:[#allocation21_spill]] %s2780_s1 }
   0x3   :  { %2803 = sst [smem:[#allocation22_spill]] %s2781_s2 }
   0x4   :  { %2804 = sst [smem:[#allocation23_spill]] %s2782_s3 }
   0x5   :  { %8 = vsyncpa [#allocation4], 0 }
   0x6   :  { %9 = vsyncpa [#allocation3], 0 }
   0x7   :  { %11 = vsyncpa [#allocation3 + $0x1], 0  ;;  %s1777_s12 = smov 0   ;;  %s1779_s13 = smov 0  }
   0x8   :  { %s1781_s14 = smov 0   ;;  %s1783_s15 = smov 0  }
   0x9   :  { %s1785_s16 = smov 0   ;;  %s1787_s17 = smov 0  }
   0xa LB: > { %2805 = sst [smem:[#allocation8_spill]] %s1721_s12  ;;  %s1473_s18 = sadd.s32 4294967295, %s1741_s17   ;;  %s1741_s17 = sphi %s1787_s17, %s17_s17   ;;  %s1737_s16 = sphi %s1785_s16, %s2848_s16   ;;  %s1733_s15 = sphi %s1783_s15, %s2847_s15   ;;  %s1729_s14 = sphi %s1781_s14, %s2846_s14   ;;  %s1725_s13 = sphi %s1779_s13, %s2845_s13   ;;  %s1721_s12 = sphi %s1777_s12, %s2844_s12  }
   0xb   : > { %2806 = sst [smem:[#allocation9_spill]] %s1725_s13  ;;  %s1474_s19 = sadd.s32 4294967294, %s1741_s17  }
   0xc   : > { %2807 = sst [smem:[#allocation10_spill]] %s1729_s14  ;;  %s29_s20 = sadd.s32 1, %s1737_s16 }
   0xd   : > { %2808 = sst [smem:[#allocation11_spill]] %s1733_s15  ;;  %s106_s21 = sadd.s32 1, %s1729_s14 }
   0xe   : > { %2809 = sst [smem:[#allocation12_spill]] %s1737_s16  ;;  %p31_p0 = scmp.ge.s32.totalorder %s29_s20, 2 }
   0xf   : > { %2810 = sst [smem:[#allocation13_spill]] %s1741_s17  ;;  %p116_p1 = scmp.ne.s32.totalorder %s1729_s14, %s1725_s13 }
  0x10   : > { %p117_p2 = scmp.eq.s32.totalorder %s1473_s18, 1  ;;  %p122_p3 = scmp.ne.s32.totalorder %s1725_s13, %s1721_s12 }
  0x11   : > { %s2850_s20 = smov (%p31_p0, %s29_s20), 0  ;;  %p123_p5 = scmp.eq.s32.totalorder %s1474_s19, 1 }
  0x12   : > { %2811 = sst [smem:[#allocation14_spill]] %s2850_s20  ;;  %p1817_p4 = por %p117_p2, %p116_p1 }
  0x13   : > { %s101_s23 = ssub.s32 %s1737_s16, %s2850_s20  ;;  %p1475_p6 = scmp.ge.s32.totalorder %s1741_s17, 1 }
  0x14   : > { %s2812_s22 = scalar_select %p1817_p4, 1, 0 }
  0x15   : > { %p104_p7 = scmp.eq.s32.totalorder %s101_s23, 0  ;;  %p1824_p8 = por %p123_p5, %p122_p3 }
  0x16   : > { %2813 = sst [smem:[#allocation15_spill]] %s2812_s22  ;;  %p130_p9 = scmp.lt.s32.totalorder %s1741_s17, 3 }
  0x17   : > { %s2814_s24 = scalar_select %p1824_p8, 1, 0 }
  0x18   : > { %s1830_s25 = scalar_select %p104_p7, %s1729_s14, %s106_s21  }
  0x19   : > { %2815 = sst [smem:[#allocation16_spill]] %s2814_s24  ;;  %p1832_p10 = pnand %p1475_p6, %p130_p9 }
  0x1a   : > { %2816 = sst [smem:[#allocation17_spill]] %s1830_s25  ;;  %p1836_p11 = scmp.eq.s32.totalorder %s1473_s18, 0 }
  0x1b   : > { %s2819_s1 = sld [smem:[#allocation21_spill]]  ;;  %p1571_p12 = pneg %p1832_p10 }
  0x1d   : > { %p1572_p13 = pnand %p1836_p11, %p1571_p12 }
  0x1f   : > { %p1646_p1 = pneg %p1572_p13 }
  0x21   : > { %s143_s30 = sshll.u32 %s2819_s1, 4  ;;  %s144_s30 = int_to_ptr.vmem [resolvable:$true] %s143_s30 }
  0x22   : > { %s1644_s4 = scalar_lea.vmem %s144_s30, 16  ;;  %p1652_p5 = scmp.lt.s32.totalorder %s144_s30, %s144_s30 }
  0x23   : > { %p1645_p0 = scmp.ne.s32.totalorder %s144_s30, %s1644_s4  ;;  %p1653_p6 = scmp.lt.s32.totalorder %s1644_s4, %s1644_s4 }
  0x25   : > { %p1647_p2 = pnand %p1646_p1, %p1645_p0  ;;  %p1654_p7 = por %p1653_p6, %p1652_p5 }
  0x27   : > { %p1648_p3 = pneg %p1647_p2 }
  0x29   : > { %p1655_p9 = pnand %p1654_p7, %p1648_p3 }
  0x2b   : > { %1658 = shalt.err (!%p1655_p9)
}
  0x2c   : > { %s1743_s5 = smov [#allocation2]   ;;  %167 = sbr.rel (%p1832_p10) target bundleno = 461 (0x1cd), region = 32 }
  0x2d   : > { %1574 = dma.vmem_to_smem (!%p1572_p13), %s144_s30, 16, %s1743_s5, [#allocation4]  }
  0x33   : > { %1712 = dma.done.wait (%p1836_p11), [#allocation4], 16  }
  0x34   : > { %1714 = vsyncadd (%p1836_p11), [#allocation4], 4294967280 }
  0x35   : > { %173 = sfence }
  0x36   : > { %p192_p12 = scmp.lt.s32.totalorder %s1733_s15, 1  ;;  %s1502_s6 = sld [smem:[#allocation2 + $0xa]]  ;;  %vm245_vm0 = vcmask 1046528   ;;  %vm305_vm1 = vcmask 1045504   ;;  %vm1332_vm2 = vcmask 130048   ;;  %vm1334_vm3 = vcmask 261120  }
  0x37   : > { %s1482_s7 = sld [smem:[#allocation2 + $0x1]]  ;;  %s1483_s9 = sld [smem:[#allocation2 + $0x2]]  ;;  %vm1336_vm4 = vcmask 392192   ;;  %vm1338_vm5 = vcmask 523264   ;;  %vm1340_vm6 = vcmask 654336   ;;  %vm1342_vm7 = vcmask 785408  }
  0x38   : > { %s193_s8 = scalar_select %p192_p12, %s1733_s15, 1  ;;  %vm1344_vm8 = vcmask 916480  }
  0x39   : > { %s2820_s0 = sld [smem:[#allocation20_spill]]  ;;  %s1503_s21 = sld [smem:[#allocation2 + $0xb]] }
  0x3a   : > { %s1564_s10 = smul.u32 96, %s193_s8  ;;  %s1744_s23 = smov 127  }
  0x3b   : > { %s1522_s26 = sld [smem:[#allocation2 + $0x13]]  ;;  %s1485_s27 = sld [smem:[#allocation2 + $0x4]] }
  0x3c   : > { %v401_v2 = vstv %s1502_s6  ;;  %s1523_s28 = sld [smem:[#allocation2 + $0x14]]  ;;  %s1505_s29 = sld [smem:[#allocation2 + $0xd]] }
  0x3d   : > { %v210_v6 = vstv %s1482_s7  ;;  %v224_v10 = vstv %s1483_s9  ;;  %s1486_s30 = sld [smem:[#allocation2 + $0x5]]  ;;  %s1745_s4 = smov 126  }
  0x3e   : > { %s1884_s5 = sld [smem:[#allocation2 + $0x1c]]  ;;  %s1891_s6 = sld [smem:[#allocation2 + $0x1d]] }
  0x3f   : > { %s1858_s19 = scalar_lea.vmem %s2820_s0, %s1564_s10  ;;  %v415_v13 = vstv %s1503_s21  ;;  %s1896_s7 = sld [smem:[#allocation2 + $0xe]] }
  0x40   : > { %v1861_v0 = vld [vmem:[%s1858_s19 + $0x18] sm:$0xff]  ;;  %v1864_v1 = vld [vmem:[%s1858_s19 + $0x20] sm:$0xff]  ;;  %v1871_v5 = vld [vmem:[%s1858_s19 + $0x8] sm:$0xff]  ;;  %s1905_s8 = sld [smem:[#allocation2 + $0x16]]  ;;  %s1917_s9 = sld [smem:[#allocation2 + $0x8]] }
  0x41   : > { %v1867_v3 = vld [vmem:[%s1858_s19] sm:$0xff]  ;;  %v402_v4 = vmul.f32 %v1861_v0, %v401_v2  ;;  %v403_v8 = vmul.f32 %v1864_v1, %v401_v2  ;;  %v212_v9 = vmul.f32 %v210_v6, %v1871_v5  ;;  %v226_v11 = vmul.f32 %v224_v10, %v1871_v5  ;;  %v1889_v16 = vld [vmem:[%s1858_s19 + $0x38] sm:$0xff]  ;;  %v1894_v18 = vld [vmem:[%s1858_s19 + $0x30] sm:$0xff]  ;;  %s1930_s10 = sld [smem:[#allocation2 + $0x11]]  ;;  %s1936_s11 = sld [smem:[#allocation2 + $0x17]] }
  0x42   : > { %v211_v7 = vmul.f32 %v210_v6, %v1867_v3  ;;  %v225_v12 = vmul.f32 %v224_v10, %v1867_v3  ;;  %v417_v14 = vmul.f32 %v1864_v1, %v415_v13  ;;  %v416_v15 = vmul.f32 %v1861_v0, %v415_v13  ;;  %v1901_v20 = vld [vmem:[%s1858_s19 + $0x10] sm:$0x3]  ;;  %v1908_v24 = vld [vmem:[%s1858_s19 + $0x28] sm:$0x3]  ;;  %v1945_v49 = vld [vmem:[%s1858_s19 + $0x40] sm:$0x3] }
  0x43   : > { %406 = vrot.lane.b32.xlu1 %v402_v4, %s1744_s23  ;;  %v606_v17 = vstv %s1522_s26  ;;  %v256_v21 = vstv %s1485_s27  ;;  %v620_v23 = vstv %s1523_s28  ;;  %s1949_s18 = sld [smem:[#allocation2 + $0x1f]]  ;;  %s1972_s26 = sld [smem:[#allocation2 + $0x10]] }
  0x44   : > { %215 = vrot.lane.b32.xlu0 %v211_v7, %s1744_s23  ;;  %v608_v19 = vmul.f32 %v1889_v16, %v606_v17  ;;  %v607_v22 = vmul.f32 %v1894_v18, %v606_v17  ;;  %v446_v25 = vstv %s1505_s29  ;;  %v258_v26 = vmul.f32 %v256_v21, %v1871_v5  ;;  %v1921_v33 = vld [vmem:[%s1858_s19 + $0x50] sm:$0xff]  ;;  %v1924_v34 = vld [vmem:[%s1858_s19 + $0x48] sm:$0xff]  ;;  %s1955_s21 = sld [smem:[#allocation2 + $0x7]]  ;;  %s1977_s27 = sld [smem:[#allocation2 + $0x1a]] }
  0x45   : > { %v259_v27 = vmul.f32 %v256_v21, %v1901_v20  ;;  %v277_v28 = vstv %s1486_s30  ;;  %v622_v29 = vmul.f32 %v1889_v16, %v620_v23  ;;  %v621_v30 = vmul.f32 %v1894_v18, %v620_v23  ;;  %s2003_s28 = sld [smem:[#allocation2 + $0x23]]  ;;  %s2071_s30 = sld [smem:[#allocation2 + $0xc]] }
  0x46   : > { %v811_v31 = vstv %s1884_s5  ;;  %v257_v32 = vmul.f32 %v256_v21, %v1867_v3  ;;  %v448_v35 = vmul.f32 %v1864_v1, %v446_v25  ;;  %v449_v36 = vmul.f32 %v1908_v24, %v446_v25  ;;  %s2069_s29 = sld [smem:[#allocation2 + $0x3]]  ;;  %s2075_s5 = sld [smem:[#allocation2 + $0x15]] }
  0x47   : > { %408 = vrot.lane.b32.xlu1 %v403_v8, %s1744_s23  ;;  %v447_v37 = vmul.f32 %v1861_v0, %v446_v25  ;;  %v825_v38 = vstv %s1891_s6  ;;  %v279_v39 = vmul.f32 %v277_v28, %v1871_v5  ;;  %v280_v40 = vmul.f32 %v277_v28, %v1901_v20  ;;  %s2083_s6 = sld [smem:[#allocation2 + $0x1e]]  ;;  %s2389_s0 = sld [smem:[#allocation2 + $0x2a]] }
  0x48   : > { %217 = vrot.lane.b32.xlu0 %v212_v9, %s1744_s23  ;;  %v264_v41 = vrot.slane %v258_v26, 1  ;;  %v266_v42 = vrot.slane %v259_v27, 1  ;;  %v278_v43 = vmul.f32 %v277_v28, %v1867_v3  ;;  %v467_v44 = vstv %s1896_s7  ;;  %v2016_v27 = vld [vmem:[%s1858_s19 + $0x58] sm:$0x3]  ;;  %s2040_s19 = sld [smem:[#allocation2 + $0x20]]  ;;  %s2142_s7 = sld [smem:[#allocation2 + $0x6]] }
  0x49   : > { %v813_v45 = vmul.f32 %v1921_v33, %v811_v31  ;;  %v812_v46 = vmul.f32 %v1924_v34, %v811_v31  ;;  %v263_v47 = vrot.slane %v257_v32, 1  ;;  %v1942_v48 = vmul.f32 %v1921_v33, %v825_v38  ;;  %s2822_s2 = sld [smem:[#allocation22_spill]]  ;;  %s2397_s16 = sld [smem:[#allocation2 + $0x3a]] }
  0x4a   : > { %v454_v50 = vrot.slane %v448_v35, 1  ;;  %v456_v51 = vrot.slane %v449_v36, 1  ;;  %v453_v52 = vrot.slane %v447_v37, 1  ;;  %v651_v53 = vstv %s1905_s8  ;;  %s2159_s8 = sld [smem:[#allocation2 + $0xf]]  ;;  %s2391_s1 = sld [smem:[#allocation2 + $0x2e]] }
  0x4b   : > { %231 = vrot.lane.b32.xlu1 %v226_v11, %s1745_s4  ;;  %v285_v54 = vrot.slane %v279_v39, 1  ;;  %v287_v55 = vrot.slane %v280_v40, 1  ;;  %v1952_v56 = vmul.f32 %v1864_v1, %v467_v44  ;;  %v470_v57 = vmul.f32 %v1908_v24, %v467_v44  ;;  %s2395_s20 = sld [smem:[#allocation2 + $0x36]]  ;;  %s2403_s14 = sld [smem:[#allocation2 + $0x42]] }
  0x4c   : > { %229 = vrot.lane.b32.xlu0 %v225_v12, %s1745_s4  ;;  %v267_v58 = vsel %vm245_vm0, %v264_v41, %v266_v42  ;;  %v1959_v59 = vmul.f32 %v1924_v34, %v825_v38  ;;  %v284_v60 = vrot.slane %v278_v43, 1  ;;  %v1962_v61 = vmul.f32 %v1861_v0, %v467_v44  ;;  %s2399_s25 = sld [smem:[#allocation2 + $0x3e]]  ;;  %s2408_s24 = sld [smem:[#allocation2 + $0x27]] }
  0x4d   : > { %v265_v62 = vsel %vm245_vm0, %v263_v47, %v264_v41  ;;  %v1967_v63 = vmul.f32 %v1889_v16, %v651_v53  ;;  %v1970_v2 = vmul.f32 %v1945_v49, %v651_v53  ;;  %v1975_v4 = vstv %s1917_s9  ;;  %s2171_s9 = sld [smem:[#allocation2 + $0x18]]  ;;  %s2410_s12 = sld [smem:[#allocation2 + $0x2b]] }
  0x4e   : > { %v457_v6 = vsel %vm245_vm0, %v454_v50, %v456_v51  ;;  %v455_v7 = vsel %vm245_vm0, %v453_v52, %v454_v50  ;;  %v1983_v8 = vmul.f32 %v1894_v18, %v651_v53  ;;  %v1986_v9 = vstv %s1930_s10  ;;  %s2173_s10 = sld [smem:[#allocation2 + $0x21]]  ;;  %s2415_s17 = sld [smem:[#allocation2 + $0x2f]] }
  0x4f   : > { %422 = vrot.lane.b32.xlu1 %v417_v14, %s1745_s4  ;;  %v1989_v10 = vsel %vm245_vm0, %v285_v54, %v287_v55  ;;  %v475_v11 = vrot.slane %v1952_v56, 1  ;;  %v477_v12 = vrot.slane %v470_v57, 1  ;;  %v1994_v13 = vmul.f32 %v1975_v4, %v1871_v5  ;;  %s2417_s3 = sld [smem:[#allocation2 + $0x33]]  ;;  %s2423_s22 = sld [smem:[#allocation2 + $0x37]] }
  0x50   : > { %420 = vrot.lane.b32.xlu0 %v416_v15, %s1745_s4  ;;  %v1997_v14 = vsel %vm245_vm0, %v284_v60, %v285_v54  ;;  %v474_v15 = vrot.slane %v1962_v61, 1  ;;  %v672_v17 = vstv %s1936_s11  ;;  %v659_v21 = vrot.slane %v1967_v63, 1  ;;  %s2223_s11 = sld [smem:[#allocation2 + $0x19]]  ;;  %s2425_s15 = sld [smem:[#allocation2 + $0x3b]] }
  0x51   : > { %v345_v23 = vrot.slane %v1994_v13, 2  ;;  %v2011_v25 = vmul.f32 %v1864_v1, %v1986_v9  ;;  %v658_v26 = vrot.slane %v1983_v8, 1  ;;  %v856_v28 = vstv %s1949_s18  ;;  %s1548_s18 = sld [smem:[#allocation2 + $0x22]]  ;;  %s2429_s13 = sld [smem:[#allocation2 + $0x3f]] }
  0x52   : > { %v2024_v31 = vsel %vm245_vm0, %v475_v11, %v477_v12  ;;  %v674_v32 = vmul.f32 %v1889_v16, %v672_v17  ;;  %v316_v35 = vstv %s1955_s21  ;;  %v675_v37 = vmul.f32 %v1945_v49, %v672_v17  ;;  %s2374_s21 = sld [smem:[#allocation2 + $0x31]] }
  0x53   : > { %613 = vrot.lane.b32.xlu1 %v608_v19, %s1744_s23  ;;  %v338_v19 = vmul.f32 %v1975_v4, %v1867_v3  ;;  %v534_v36 = vrot.slane %v2011_v25, 2  ;;  %v673_v38 = vmul.f32 %v1894_v18, %v672_v17  ;;  %v858_v41 = vmul.f32 %v1921_v33, %v856_v28  ;;  %2824 = sst [smem:[#allocation19_spill]] %s2410_s12 }
  0x54   : > { %611 = vrot.lane.b32.xlu0 %v607_v22, %s1744_s23  ;;  %v661_v22 = vrot.slane %v1970_v2, 1  ;;  %v859_v42 = vmul.f32 %v2016_v27, %v856_v28  ;;  %v505_v43 = vstv %s1972_s26  ;;  %v2043_v44 = vstv %s1977_s27  ;;  %s1501_s27 = sld [smem:[#allocation2 + $0x9]]  ;;  %s2376_s26 = sld [smem:[#allocation2 + $0x35]] }
  0x55   : > { %v2055_v50 = vmul.f32 %v1889_v16, %v2043_v44  ;;  %v680_v51 = vrot.slane %v674_v32, 1  ;;  %v319_v52 = vmul.f32 %v316_v35, %v1901_v20  ;;  %v317_v53 = vmul.f32 %v316_v35, %v1867_v3 }
  0x56   : > { %v732_v54 = vmul.f32 %v1894_v18, %v2043_v44  ;;  %v2062_v55 = vmul.f32 %v1864_v1, %v505_v43  ;;  %v508_v57 = vmul.f32 %v1908_v24, %v505_v43  ;;  %v2067_v60 = vstv %s2003_s28  ;;  %s203_s28 = sld [smem:[#allocation2]] }
  0x57   : > { %627 = vrot.lane.b32.xlu1 %v622_v29, %s1745_s4  ;;  %v344_v29 = vrot.slane %v338_v19, 2  ;;  %v679_v2 = vrot.slane %v673_v38, 1  ;;  %v866_v8 = vrot.slane %v859_v42, 1  ;;  %v2081_v19 = vmul.f32 %v1921_v33, %v2067_v60 }
  0x58   : > { %625 = vrot.lane.b32.xlu0 %v621_v30, %s1745_s4  ;;  %v527_v30 = vmul.f32 %v1861_v0, %v1986_v9  ;;  %v515_v32 = vrot.slane %v508_v57, 2  ;;  %v476_v38 = vsel %vm245_vm0, %v474_v15, %v475_v11  ;;  %v429_v57 = vstv %s2071_s30  ;;  %s2353_s30 = sld [smem:[#allocation2 + $0x2c]] }
  0x59   : > { %v2034_v39 = vsel %vm305_vm1, %v344_v29, %v345_v23  ;;  %v681_v61 = vsel %vm245_vm0, %v679_v2, %v680_v51  ;;  %v839_v2 = vstv %s2083_s6  ;;  %s2357_s6 = sld [smem:[#allocation2 + $0x34]] }
  0x5a   : > { %v533_v40 = vrot.slane %v527_v30, 2  ;;  %v513_v30 = vrot.slane %v2062_v55, 2 }
  0x5b   : > { %818 = vrot.lane.b32.xlu1 %v813_v45, %s1744_s23  ;;  %v857_v45 = vmul.f32 %v1924_v34, %v856_v28  ;;  %v323_v28 = vrot.slane %v317_v53, 2 }
  0x5c   : > { %816 = vrot.lane.b32.xlu0 %v812_v46, %s1744_s23  ;;  %v318_v46 = vmul.f32 %v316_v35, %v1871_v5  ;;  %v2051_v47 = vsel %vm305_vm1, %v533_v40, %v534_v36  ;;  %v2094_v35 = vmul.f32 %v1861_v0, %v505_v43  ;;  %v662_v40 = vsel %vm245_vm0, %v659_v21, %v661_v22 }
  0x5d   : > { %v863_v12 = vrot.slane %v857_v45, 1  ;;  %v238_v45 = vstv %s2069_s29  ;;  %s2351_s29 = sld [smem:[#allocation2 + $0x28]] }
  0x5e   : > { %v324_v17 = vrot.slane %v318_v46, 2  ;;  %v241_v53 = vmul.f32 %v238_v45, %v1901_v20 }
  0x5f   : > { %270 = vrot.lane.b32.xlu1 %v267_v58, %s1744_s23  ;;  %v739_v58 = vrot.slane %v2055_v50, 2  ;;  %v2821_v50 = vrot.slane %v2081_v19, 2 }
  0x60   : > { %268 = vrot.lane.b32.xlu0 %v265_v62, %s1744_s23  ;;  %v682_v62 = vrot.slane %v675_v37, 1  ;;  %v2783_v37 = vrot.slane %v2081_v19, 2 }
  0x62   : > { %v683_v56 = vsel %vm245_vm0, %v680_v51, %v682_v62  ;;  %v634_v62 = vstv %s2075_s5  ;;  %s2355_s5 = sld [smem:[#allocation2 + $0x30]] }
  0x63   : > { %460 = vrot.lane.b32.xlu1 %v457_v6, %s1744_s23  ;;  %v864_v6 = vrot.slane %v858_v41, 1  ;;  %v877_v41 = vstv %s2040_s19  ;;  %s2349_s19 = sld [smem:[#allocation2 + $0x24]] }
  0x64   : > { %458 = vrot.lane.b32.xlu0 %v455_v7, %s1744_s23  ;;  %v738_v7 = vrot.slane %v732_v54, 2  ;;  %v2139_v43 = vmul.f32 %v1921_v33, %v877_v41  ;;  %v2147_v46 = vmul.f32 %v2016_v27, %v877_v41  ;;  %v2150_v51 = vmul.f32 %v1924_v34, %v877_v41 }
  0x65   : > { %v2116_v11 = vsel %vm245_vm0, %v864_v6, %v866_v8  ;;  %v2119_v15 = vsel %vm245_vm0, %v863_v12, %v864_v6  ;;  %v239_v54 = vmul.f32 %v238_v45, %v1867_v3  ;;  %v249_v6 = vrot.slane %v241_v53, 1 }
  0x66   : > { %v2088_v29 = vsel %vm305_vm1, %v738_v7, %v739_v58  ;;  %v431_v7 = vmul.f32 %v1864_v1, %v429_v57  ;;  %v432_v8 = vmul.f32 %v1908_v24, %v429_v57  ;;  %v635_v41 = vmul.f32 %v1894_v18, %v634_v62 }
  0x67   : > { %832 = vrot.lane.b32.xlu1 %v1942_v48, %s1745_s4  ;;  %v326_v48 = vrot.slane %v319_v52, 2  ;;  %v240_v52 = vmul.f32 %v238_v45, %v1871_v5  ;;  %v246_v12 = vrot.slane %v239_v54, 1 }
  0x68   : > { %830 = vrot.lane.b32.xlu0 %v1959_v59, %s1745_s4  ;;  %v937_v59 = vmul.f32 %v1924_v34, %v2067_v60  ;;  %v641_v54 = vrot.slane %v635_v41, 1 }
  0x69   : > { %v2122_v22 = vsel %vm305_vm1, %v324_v17, %v326_v48  ;;  %v636_v48 = vmul.f32 %v1889_v16, %v634_v62 }
  0x6a   : > { %v943_v42 = vrot.slane %v937_v59, 2 }
  0x6b   : > { %291 = vrot.lane.b32.xlu1 %v1989_v10, %s1745_s4  ;;  %v660_v10 = vsel %vm245_vm0, %v658_v26, %v659_v21  ;;  %v2135_v21 = vsel %vm305_vm1, %v513_v30, %v515_v32  ;;  %v512_v26 = vrot.slane %v2094_v35, 2  ;;  %v437_v32 = vrot.slane %v431_v7, 1 }
  0x6c   : > { %289 = vrot.lane.b32.xlu0 %v1997_v14, %s1745_s4  ;;  %v2125_v14 = vsel %vm305_vm1, %v323_v28, %v324_v17  ;;  %v2130_v63 = vsel %vm305_vm1, %v943_v42, %v2783_v37  ;;  %v430_v17 = vmul.f32 %v1861_v0, %v429_v57  ;;  %v637_v28 = vmul.f32 %v1945_v49, %v634_v62 }
  0x6d   : > { %v841_v57 = vmul.f32 %v1921_v33, %v839_v2  ;;  %v842_v62 = vmul.f32 %v2016_v27, %v839_v2  ;;  %v298_v7 = vstv %s2142_s7  ;;  %s2359_s7 = sld [smem:[#allocation2 + $0x38]] }
  0x6e   : > { %v436_v45 = vrot.slane %v430_v17, 1 }
  0x6f   : > { %481 = vrot.lane.b32.xlu1 %v2024_v31, %s1745_s4  ;;  %v247_v31 = vrot.slane %v240_v52, 1  ;;  %v642_v52 = vrot.slane %v636_v48, 1  ;;  %v849_v17 = vrot.slane %v842_v62, 1  ;;  %v300_v48 = vmul.f32 %v298_v7, %v1871_v5 }
  0x70   : > { %479 = vrot.lane.b32.xlu0 %v476_v38, %s1745_s4  ;;  %v439_v38 = vrot.slane %v432_v8, 1 }
  0x71   : > { %v2168_v59 = vsel %vm245_vm0, %v247_v31, %v249_v6  ;;  %v2177_v42 = vsel %vm245_vm0, %v246_v12, %v247_v31  ;;  %v2185_v6 = vsel %vm245_vm0, %v436_v45, %v437_v32  ;;  %v840_v31 = vmul.f32 %v1924_v34, %v839_v2 }
  0x72   : > { %v2180_v53 = vsel %vm245_vm0, %v437_v32, %v439_v38  ;;  %v2194_v8 = vsel %vm245_vm0, %v641_v54, %v642_v52  ;;  %v847_v12 = vrot.slane %v841_v57, 1  ;;  %v301_v32 = vmul.f32 %v298_v7, %v1901_v20 }
  0x73   : > { %665 = vrot.lane.b32.xlu1 %v662_v40, %s1744_s23  ;;  %v644_v40 = vrot.slane %v637_v28, 1  ;;  %v846_v28 = vrot.slane %v840_v31, 1  ;;  %v299_v38 = vmul.f32 %v298_v7, %v1867_v3  ;;  %v488_v2 = vstv %s2159_s8  ;;  %s2361_s8 = sld [smem:[#allocation2 + $0x3c]] }
  0x74   : > { %663 = vrot.lane.b32.xlu0 %v660_v10, %s1744_s23  ;;  %v2202_v41 = vsel %vm245_vm0, %v847_v12, %v849_v17  ;;  %v490_v45 = vmul.f32 %v1864_v1, %v488_v2  ;;  %v489_v57 = vmul.f32 %v1861_v0, %v488_v2  ;;  %v693_v7 = vstv %s2171_s9  ;;  %s2363_s9 = sld [smem:[#allocation2 + $0x40]] }
  0x75   : > { %v2188_v10 = vsel %vm245_vm0, %v642_v52, %v644_v40  ;;  %v491_v52 = vmul.f32 %v1908_v24, %v488_v2  ;;  %v2207_v40 = vsel %vm245_vm0, %v846_v28, %v847_v12  ;;  %v306_v54 = vrot.slane %v299_v38, 2 }
  0x76   : > { %v496_v62 = vrot.slane %v490_v45, 2  ;;  %v898_v17 = vstv %s2173_s10  ;;  %v495_v28 = vrot.slane %v489_v57, 2  ;;  %v696_v38 = vmul.f32 %v1945_v49, %v693_v7  ;;  %s2365_s10 = sld [smem:[#allocation2 + $0x25]] }
  0x77   : > { %686 = vrot.lane.b32.xlu1 %v683_v56, %s1745_s4  ;;  %v307_v56 = vrot.slane %v300_v48, 2  ;;  %v498_v31 = vrot.slane %v491_v52, 2  ;;  %v694_v2 = vmul.f32 %v1894_v18, %v693_v7 }
  0x78   : > { %684 = vrot.lane.b32.xlu0 %v681_v61, %s1745_s4  ;;  %v309_v61 = vrot.slane %v301_v32, 2  ;;  %v695_v32 = vmul.f32 %v1889_v16, %v693_v7  ;;  %v2232_v45 = vsel %vm305_vm1, %v495_v28, %v496_v62  ;;  %v703_v57 = vrot.slane %v696_v38, 2 }
  0x79   : > { %v2220_v12 = vsel %vm305_vm1, %v306_v54, %v307_v56  ;;  %v885_v54 = vrot.slane %v2139_v43, 1  ;;  %v887_v7 = vrot.slane %v2147_v46, 1  ;;  %v884_v43 = vrot.slane %v2150_v51, 1 }
  0x7a   : > { %v2217_v48 = vsel %vm305_vm1, %v307_v56, %v309_v61  ;;  %v701_v52 = vrot.slane %v695_v32, 2  ;;  %v901_v56 = vmul.f32 %v2016_v27, %v898_v17  ;;  %v899_v61 = vmul.f32 %v1924_v34, %v898_v17  ;;  %2823 = sst [smem:[#allocation18_spill]] %s2363_s9 }
  0x7b   : > { %870 = vrot.lane.b32.xlu1 %v2116_v11, %s1744_s23  ;;  %v2226_v11 = vsel %vm305_vm1, %v496_v62, %v498_v31  ;;  %v700_v31 = vrot.slane %v694_v2, 2  ;;  %v340_v62 = vmul.f32 %v1975_v4, %v1901_v20  ;;  %v888_v4 = vsel %vm245_vm0, %v885_v54, %v887_v7 }
  0x7c   : > { %868 = vrot.lane.b32.xlu0 %v2119_v15, %s1744_s23  ;;  %v900_v15 = vmul.f32 %v1921_v33, %v898_v17  ;;  %v908_v28 = vrot.slane %v901_v56, 2  ;;  %v905_v32 = vrot.slane %v899_v61, 2  ;;  %v2251_v17 = vsel %vm305_vm1, %v701_v52, %v703_v57 }
  0x7d   : > { %v347_v55 = vrot.slane %v340_v62, 2  ;;  %v886_v35 = vsel %vm245_vm0, %v884_v43, %v885_v54  ;;  %v1746_v57 = vmov 0  }
  0x7e   : > { %v906_v37 = vrot.slane %v900_v15, 2  ;;  %1643 = vset.pattern.permute.xlu0 %v1746_v57 }
  0x7f   : > { %330 = vrot.lane.b32.xlu1 %v2122_v22, %s1744_s23  ;;  %v514_v22 = vsel %vm305_vm1, %v512_v26, %v513_v30  ;;  %v529_v30 = vmul.f32 %v1908_v24, %v1986_v9  ;;  %v710_v26 = vstv %s2223_s11  ;;  %s2367_s11 = sld [smem:[#allocation2 + $0x29]] }
  0x80   : > { %328 = vrot.lane.b32.xlu0 %v2125_v14, %s1744_s23  ;;  %v2254_v14 = vsel %vm305_vm1, %v700_v31, %v701_v52  ;;  %v2257_v46 = vsel %vm305_vm1, %v906_v37, %v908_v28  ;;  %v2260_v20 = vsel %vm305_vm1, %v905_v32, %v906_v37  ;;  %v348_v37 = vsel %vm305_vm1, %v345_v23, %v347_v55 }
  0x81   : > { %v712_v51 = vmul.f32 %v1889_v16, %v710_v26  ;;  %v713_v38 = vmul.f32 %v1945_v49, %v710_v26  ;;  %v711_v2 = vmul.f32 %v1894_v18, %v710_v26  ;;  %v734_v23 = vmul.f32 %v1945_v49, %v2043_v44 }
  0x82   : > { %v915_v52 = vstv %s1548_s18  ;;  %v939_v31 = vmul.f32 %v2016_v27, %v2067_v60  ;;  %v395_v60 = vstv %s1501_s27  ;;  %s2369_s18 = sld [smem:[#allocation2 + $0x2d]]  ;;  %s2381_s27 = sld [smem:[#allocation2 + $0x39]] }
  0x83   : > { %519 = vrot.lane.b32.xlu1 %v2135_v21, %s1744_s23  ;;  %v536_v21 = vrot.slane %v529_v30, 2  ;;  %v718_v9 = vrot.slane %v712_v51, 2  ;;  %v720_v13 = vrot.slane %v713_v38, 2  ;;  %v717_v15 = vrot.slane %v711_v2, 2 }
  0x84   : > { %517 = vrot.lane.b32.xlu0 %v514_v22, %s1744_s23  ;;  %v741_v61 = vrot.slane %v734_v23, 2  ;;  %v918_v25 = vmul.f32 %v2016_v27, %v915_v52  ;;  %v916_v54 = vmul.f32 %v1924_v34, %v915_v52  ;;  %v946_v28 = vrot.slane %v939_v31, 2  ;;  %v1353_v27 = vld [vmem:[%s2822_s2] sm:$0xff]  ;;  %s2393_s2 = sld [smem:[#allocation2 + $0x32]] }
  0x85   : > { %v537_v24 = vsel %vm305_vm1, %v534_v36, %v536_v21  ;;  %v721_v56 = vsel %vm305_vm1, %v718_v9, %v720_v13  ;;  %v719_v36 = vsel %vm305_vm1, %v717_v15, %v718_v9  ;;  %v396_v22 = vmul.f32 %v1861_v0, %v395_v60 }
  0x86   : > { %v742_v49 = vsel %vm305_vm1, %v739_v58, %v741_v61  ;;  %v922_v7 = vrot.slane %v916_v54, 2  ;;  %v947_v58 = vsel %vm305_vm1, %v2821_v50, %v946_v28  ;;  %v397_v30 = vmul.f32 %v1864_v1, %v395_v60 }
  0x87   : > { %891 = vrot.lane.b32.xlu1 %v888_v4, %s1745_s4 }
  0x88   : > { %889 = vrot.lane.b32.xlu0 %v886_v35, %s1745_s4 }
  0x8b   : > { %351 = vrot.lane.b32.xlu1 %v348_v37, %s1745_s4 }
  0x8c   : > { %349 = vrot.lane.b32.xlu0 %v2034_v39, %s1745_s4  ;;  %v917_v39 = vmul.f32 %v1921_v33, %v915_v52 }
  0x8e   : > { %v923_v44 = vrot.slane %v917_v39, 2 }
  0x8f   : > { %540 = vrot.lane.b32.xlu1 %v537_v24, %s1745_s4 }
  0x90   : > { %538 = vrot.lane.b32.xlu0 %v2051_v47, %s1745_s4  ;;  %v925_v47 = vrot.slane %v918_v25, 2  ;;  %v924_v32 = vsel %vm305_vm1, %v922_v7, %v923_v44 }
  0x92   : > { %v926_v62 = vsel %vm305_vm1, %v923_v44, %v925_v47 }
  0x93   : > { %724 = vrot.lane.b32.xlu1 %v721_v56, %s1744_s23 }
  0x94   : > { %722 = vrot.lane.b32.xlu0 %v719_v36, %s1744_s23 }
  0x97   : > { %745 = vrot.lane.b32.xlu1 %v742_v49, %s1745_s4 }
  0x98   : > { %743 = vrot.lane.b32.xlu0 %v2088_v29, %s1745_s4  ;;  %v204_v29 = vstv %s203_s28  ;;  %s2383_s28 = sld [smem:[#allocation2 + $0x3d]] }
  0x99   : > { %v205_v19 = vmul.f32 %v204_v29, %v1867_v3 }
  0x9b   : > { %929 = vrot.lane.b32.xlu1 %v926_v62, %s1744_s23 }
  0x9c   : > { %927 = vrot.lane.b32.xlu0 %v924_v32, %s1744_s23  ;;  %s1521_s23 = sld [smem:[#allocation2 + $0x12]] }
  0x9f   : > { %950 = vrot.lane.b32.xlu1 %v947_v58, %s1745_s4 }
  0xa0   : > { %948 = vrot.lane.b32.xlu0 %v2130_v63, %s1745_s4  ;;  %v206_v63 = vmul.f32 %v204_v29, %v1871_v5  ;;  %s1541_s4 = sld [smem:[#allocation2 + $0x1b]] }
  0xa2   : > { %v600_v13 = vstv %s1521_s23  ;;  %s2385_s23 = sld [smem:[#allocation2 + $0x41]] }
  0xa3   : > { %v601_v5 = vmul.f32 %v1894_v18, %v600_v13  ;;  %v602_v56 = vmul.f32 %v1889_v16, %v600_v13 }
  0xa4   : > { %1356 = vperm.xlu0 %1643, %v1353_v27  }
  0xa6   : > { %v805_v16 = vstv %s1541_s4  ;;  %s2387_s4 = sld [smem:[#allocation2 + $0x26]] }
  0xa7   : > { %v807_v28 = vmul.f32 %v1921_v33, %v805_v16 }
  0xb5   : > { %v407_v43 = vpop.permute.xlu1 %406 }
  0xb6   : > { %v412_v4 = vadd.f32 %v407_v43, %v396_v22  ;;  %v216_v55 = vpop.permute.xlu0 %215 }
  0xb7   : > { %v221_v35 = vadd.f32 %v216_v55, %v205_v19 }
  0xb9   : > { %v409_v26 = vpop.permute.xlu1 %408 }
  0xba   : > { %v413_v37 = vadd.f32 %v409_v26, %v397_v30  ;;  %v218_v21 = vpop.permute.xlu0 %217 }
  0xbb   : > { %v222_v51 = vadd.f32 %v218_v21, %v206_v63 }
  0xbd   : > { %v232_v38 = vpop.permute.xlu1 %231 }
  0xbe   : > { %v236_v2 = vadd.f32 %v232_v38, %v222_v51  ;;  %v230_v24 = vpop.permute.xlu0 %229 }
  0xbf   : > { %v235_v9 = vadd.f32 %v230_v24, %v221_v35 }
  0xc0   : > { %v254_v0 = vadd.f32 %v2168_v59, %v236_v2 }
  0xc1   : > { %v423_v3 = vpop.permute.xlu1 %422  ;;  %v253_v23 = vadd.f32 %v2177_v42, %v235_v9 }
  0xc2   : > { %v427_v15 = vadd.f32 %v423_v3, %v413_v37  ;;  %v421_v1 = vpop.permute.xlu0 %420 }
  0xc3   : > { %v426_v52 = vadd.f32 %v421_v1, %v412_v4 }
  0xc4   : > { %v444_v61 = vadd.f32 %v2180_v53, %v427_v15 }
  0xc5   : > { %v614_v39 = vpop.permute.xlu1 %613  ;;  %v443_v25 = vadd.f32 %v2185_v6, %v426_v52  ;;  %v806_v6 = vmul.f32 %v1924_v34, %v805_v16  ;;  %v358_v52 = vstv %s2349_s19 }
  0xc6   : > { %v612_v36 = vpop.permute.xlu0 %611  ;;  %v618_v57 = vadd.f32 %v614_v39, %v602_v56  ;;  %v366_v56 = vstv %s2353_s30  ;;  %v374_v39 = vstv %s2357_s6  ;;  %s2840_s6 = sld [smem:[#allocation23_spill]] }
  0xc7   : > { %v617_v54 = vadd.f32 %v612_v36, %v601_v5  ;;  %v362_v5 = vstv %s2351_s29  ;;  %v382_v36 = vstv %s2361_s8 }
  0xc9   : > { %v628_v59 = vpop.permute.xlu1 %627 }
  0xca   : > { %v632_v49 = vadd.f32 %v628_v59, %v618_v57  ;;  %v626_v44 = vpop.permute.xlu0 %625  ;;  %v547_v59 = vstv %s2365_s10  ;;  %s1756_s10 = smov [#allocation5]  }
  0xcb   : > { %v631_v42 = vadd.f32 %v626_v44, %v617_v54  ;;  %v386_v54 = vstv %s2363_s9  ;;  %v559_v44 = vstv %s2369_s18  ;;  %s2431_s9 = sld [smem:[#allocation2 + $0x43]] }
  0xcc   : > { %v649_v47 = vadd.f32 %v2188_v10, %v632_v49  ;;  %v553_v49 = vstv %s2367_s11  ;;  %s1663_s11 = sshll.u32 %s1756_s10, 4  ;;  %s1664_s11 = int_to_ptr.vmem [resolvable:$false] %s1663_s11 }
  0xcd   : > { %v819_v31 = vpop.permute.xlu1 %818  ;;  %v648_v18 = vadd.f32 %v2194_v8, %v631_v42  ;;  %v565_v42 = vstv %s2374_s21  ;;  %s1665_s18 = scalar_lea.vmem %s1664_s11, 512 }
  0xce   : > { %v817_v7 = vpop.permute.xlu0 %816  ;;  %v823_v58 = vadd.f32 %v819_v31, %v807_v28  ;;  %v571_v31 = vstv %s2376_s26  ;;  %v589_v28 = vstv %s2385_s23 }
  0xcf   : > { %v822_v27 = vadd.f32 %v817_v7, %v806_v6  ;;  %v1747_v7 = vmov 1983009808   ;;  %v752_v6 = vstv %s2387_s4 }
  0xd0   : > { %v1007_v16 = vunpack.c.l.s4 %v1747_v7 }
  0xd1   : > { %v271_v62 = vpop.permute.xlu1 %270 }
  0xd2   : > { %v269_v53 = vpop.permute.xlu0 %268  ;;  %v275_v10 = vadd.f32 %v271_v62, %v254_v0  ;;  %v1009_v62 = vlaneseq }
  0xd3   : > { %v274_v8 = vadd.f32 %v269_v53, %v253_v23  ;;  %v583_v53 = vstv %s2383_s28 }
  0xd5   : > { %v461_v32 = vpop.permute.xlu1 %460 }
  0xd6   : > { %v459_v50 = vpop.permute.xlu0 %458  ;;  %v465_v35 = vadd.f32 %v461_v32, %v444_v61  ;;  %v370_v61 = vstv %s2355_s5  ;;  %v1748_v32 = vmov 1934713408  }
  0xd7   : > { %v464_v26 = vadd.f32 %v459_v50, %v443_v25  ;;  %v378_v25 = vstv %s2359_s7  ;;  %v1071_v50 = vunpack.c.l.s4 %v1748_v32 }
  0xd9   : > { %v833_v60 = vpop.permute.xlu1 %832 }
  0xda   : > { %v837_v29 = vadd.f32 %v833_v60, %v823_v58  ;;  %v831_v22 = vpop.permute.xlu0 %830  ;;  %v764_v60 = vstv %s2391_s1  ;;  %s1750_s1 = smov 32  }
  0xdb   : > { %v836_v19 = vadd.f32 %v831_v22, %v822_v27  ;;  %v758_v27 = vstv %s2389_s0  ;;  %s1749_s0 = smov 16  }
  0xdc   : > { %v2332_v43 = vadd.f32 %v2202_v41, %v837_v29  ;;  %v770_v29 = vstv %s2393_s2  ;;  %s1751_s2 = smov 48  }
  0xdd   : > { %v292_v4 = vpop.permute.xlu1 %291  ;;  %v2335_v55 = vadd.f32 %v2207_v40, %v836_v19 }
  0xde   : > { %v296_v33 = vadd.f32 %v292_v4, %v275_v10  ;;  %v290_v30 = vpop.permute.xlu0 %289  ;;  %v776_v10 = vstv %s2395_s20  ;;  %v788_v4 = vstv %s2399_s25  ;;  %s2838_s20 = sld [smem:[#allocation11_spill]] }
  0xdf   : > { %v295_v34 = vadd.f32 %v290_v30, %v274_v8  ;;  %v782_v8 = vstv %s2397_s16  ;;  %s2837_s16 = sld [smem:[#allocation9_spill]] }
  0xe0   : > { %v2338_v63 = vadd.f32 %v2217_v48, %v296_v33 }
  0xe1   : > { %v482_v37 = vpop.permute.xlu1 %481  ;;  %v2341_v21 = vadd.f32 %v2220_v12, %v295_v34  ;;  %v794_v34 = vstv %s2403_s14  ;;  %s1754_s14 = smov 96  }
  0xe2   : > { %v486_v51 = vadd.f32 %v482_v37, %v465_v35  ;;  %v480_v41 = vpop.permute.xlu0 %479  ;;  %v1008_v35 = vunpack.c.0.s8 %v1007_v16  ;;  %v957_v37 = vstv %s2408_s24 }
  0xe3   : > { %v485_v38 = vadd.f32 %v480_v41, %v464_v26  ;;  %v1010_v26 = vshrl.u32 %v1009_v62, 7  ;;  %v1072_v41 = vunpack.c.0.s8 %v1071_v50 }
  0xe4   : > { %v2344_v2 = vadd.f32 %v2226_v11, %v486_v51  ;;  %v963_v51 = vstv %s2410_s12  ;;  %s1563_s25 = sshll.u32 %s2838_s20, 8 }
  0xe5   : > { %v666_v40 = vpop.permute.xlu1 %665  ;;  %v2347_v24 = vadd.f32 %v2232_v45, %v485_v38  ;;  %s2730_s7 = scalar_lea.hbm %s2840_s6, %s1563_s25 }
  0xe6   : > { %v664_v9 = vpop.permute.xlu0 %663  ;;  %v670_v48 = vadd.f32 %v666_v40, %v649_v47  ;;  %v969_v40 = vstv %s2415_s17  ;;  %s189_s17 = sand.u32 1, %s2837_s16  }
  0xe7   : > { %v669_v12 = vadd.f32 %v664_v9, %v648_v18  ;;  %v577_v18 = vstv %s2381_s27  ;;  %s1364_s8 = scalar_lea.sflag [#allocation3], %s189_s17 }
  0xe9   : > { %v687_v0 = vpop.permute.xlu1 %686 }
  0xea   : > { %v691_v11 = vadd.f32 %v687_v0, %v670_v48  ;;  %v685_v45 = vpop.permute.xlu0 %684 }
  0xeb   : > { %v690_v3 = vadd.f32 %v685_v45, %v669_v12 }
  0xec   : > { %v2372_v13 = vadd.f32 %v2251_v17, %v691_v11 }
  0xed   : > { %v871_v23 = vpop.permute.xlu1 %870  ;;  %v2379_v15 = vadd.f32 %v2254_v14, %v690_v3 }
  0xee   : > { %v869_v1 = vpop.permute.xlu0 %868  ;;  %v875_v58 = vadd.f32 %v871_v23, %v2332_v43 }
  0xef   : > { %v874_v22 = vadd.f32 %v869_v1, %v2335_v55  ;;  %v2461_v1 = vsub.s32 %v1008_v35, %v1010_v26 }
  0xf1   : > { %v331_v17 = vpop.permute.xlu1 %330 }
  0xf2   : > { %v329_v14 = vpop.permute.xlu0 %328  ;;  %v335_v55 = vadd.f32 %v331_v17, %v2338_v63 }
  0xf3   : > { %v334_v48 = vadd.f32 %v329_v14, %v2341_v21  ;;  %v2465_v14 = vsub.s32 %v1072_v41, %v1010_v26 }
  0xf5   : > { %v520_v57 = vpop.permute.xlu1 %519 }
  0xf6   : > { %v518_v47 = vpop.permute.xlu0 %517  ;;  %v524_v21 = vadd.f32 %v520_v57, %v2344_v2 }
  0xf7   : > { %v523_v17 = vadd.f32 %v518_v47, %v2347_v24 }
  0xf9   : > { %v892_v19 = vpop.permute.xlu1 %891 }
  0xfa   : > { %v896_v33 = vadd.f32 %v892_v19, %v875_v58  ;;  %v890_v30 = vpop.permute.xlu0 %889 }
  0xfb   : > { %v895_v43 = vadd.f32 %v890_v30, %v874_v22 }
  0xfc   : > { %v2449_v38 = vadd.f32 %v2257_v46, %v896_v33 }
  0xfd   : > { %v352_v12 = vpop.permute.xlu1 %351  ;;  %v2455_v0 = vadd.f32 %v2260_v20, %v895_v43 }
  0xfe   : > { %v356_v63 = vadd.f32 %v352_v12, %v335_v55  ;;  %v350_v46 = vpop.permute.xlu0 %349 }
  0xff   : > { %v355_v20 = vadd.f32 %v350_v46, %v334_v48 }
 0x100   : > { %v360_v7 = vmul.f32 %v358_v52, %v356_v63  ;;  %v364_v16 = vmul.f32 %v362_v5, %v356_v63  ;;  %v368_v62 = vmul.f32 %v366_v56, %v356_v63  ;;  %v372_v32 = vmul.f32 %v370_v61, %v356_v63 }
 0x101   : > { %v541_v2 = vpop.permute.xlu1 %540  ;;  %v376_v24 = vmul.f32 %v374_v39, %v356_v63  ;;  %v380_v57 = vmul.f32 %v378_v25, %v356_v63  ;;  %v384_v47 = vmul.f32 %v382_v36, %v356_v63  ;;  %v388_v50 = vmul.f32 %v386_v54, %v356_v63 }
 0x102   : > { %v545_v58 = vadd.f32 %v541_v2, %v524_v21  ;;  %v539_v22 = vpop.permute.xlu0 %538  ;;  %v359_v19 = vmul.f32 %v358_v52, %v355_v20  ;;  %v363_v33 = vmul.f32 %v362_v5, %v355_v20  ;;  %v367_v30 = vmul.f32 %v366_v56, %v355_v20 }
 0x103   : > { %v2489_v35 = vadd.f32 %v539_v22, %v523_v17  ;;  %v371_v26 = vmul.f32 %v370_v61, %v355_v20  ;;  %v375_v43 = vmul.f32 %v374_v39, %v355_v20  ;;  %v379_v41 = vmul.f32 %v378_v25, %v355_v20 }
 0x104   : > { %v549_v55 = vmul.f32 %v547_v59, %v545_v58  ;;  %v555_v48 = vmul.f32 %v553_v49, %v545_v58  ;;  %v561_v12 = vmul.f32 %v559_v44, %v545_v58  ;;  %v567_v52 = vmul.f32 %v565_v42, %v545_v58 }
 0x105   : > { %v725_v63 = vpop.permute.xlu1 %724  ;;  %v573_v5 = vmul.f32 %v571_v31, %v545_v58  ;;  %v579_v56 = vmul.f32 %v577_v18, %v545_v58  ;;  %v585_v61 = vmul.f32 %v583_v53, %v545_v58  ;;  %v591_v39 = vmul.f32 %v589_v28, %v545_v58 }
 0x106   : > { %v729_v25 = vadd.f32 %v725_v63, %v2372_v13  ;;  %v723_v46 = vpop.permute.xlu0 %722  ;;  %v551_v21 = vadd.f32 %v549_v55, %v360_v7  ;;  %v557_v17 = vadd.f32 %v555_v48, %v364_v16  ;;  %v563_v2 = vadd.f32 %v561_v12, %v368_v62 }
 0x107   : > { %v728_v22 = vadd.f32 %v723_v46, %v2379_v15  ;;  %v569_v23 = vadd.f32 %v567_v52, %v372_v32  ;;  %v575_v3 = vadd.f32 %v573_v5, %v376_v24  ;;  %v581_v45 = vadd.f32 %v579_v56, %v380_v57 }
 0x108   : > { %v587_v11 = vadd.f32 %v585_v61, %v384_v47  ;;  %v593_v9 = vadd.f32 %v591_v39, %v388_v50  ;;  %v383_v58 = vmul.f32 %v382_v36, %v355_v20  ;;  %v387_v13 = vmul.f32 %v386_v54, %v355_v20 }
 0x109   : > { %v746_v63 = vpop.permute.xlu1 %745  ;;  %v548_v7 = vmul.f32 %v547_v59, %v2489_v35  ;;  %v554_v15 = vmul.f32 %v553_v49, %v2489_v35  ;;  %v560_v16 = vmul.f32 %v559_v44, %v2489_v35  ;;  %v566_v36 = vmul.f32 %v565_v42, %v2489_v35 }
 0x10a   : > { %v750_v62 = vadd.f32 %v746_v63, %v729_v25  ;;  %v744_v54 = vpop.permute.xlu0 %743  ;;  %v572_v20 = vmul.f32 %v571_v31, %v2489_v35  ;;  %v578_v59 = vmul.f32 %v577_v18, %v2489_v35  ;;  %v584_v49 = vmul.f32 %v583_v53, %v2489_v35 }
 0x10b   : > { %v2540_v32 = vadd.f32 %v744_v54, %v728_v22  ;;  %v550_v44 = vadd.f32 %v548_v7, %v359_v19  ;;  %v556_v24 = vadd.f32 %v554_v15, %v363_v33  ;;  %v562_v57 = vadd.f32 %v560_v16, %v367_v30 }
 0x10c   : > { %v754_v42 = vmul.f32 %v752_v6, %v750_v62  ;;  %v760_v47 = vmul.f32 %v758_v27, %v750_v62  ;;  %v766_v50 = vmul.f32 %v764_v60, %v750_v62  ;;  %v772_v55 = vmul.f32 %v770_v29, %v750_v62 }
 0x10d   : > { %v930_v31 = vpop.permute.xlu1 %929  ;;  %v778_v48 = vmul.f32 %v776_v10, %v750_v62  ;;  %v784_v18 = vmul.f32 %v782_v8, %v750_v62  ;;  %v790_v53 = vmul.f32 %v788_v4, %v750_v62  ;;  %v796_v12 = vmul.f32 %v794_v34, %v750_v62 }
 0x10e   : > { %v934_v19 = vadd.f32 %v930_v31, %v2449_v38  ;;  %v928_v33 = vpop.permute.xlu0 %927  ;;  %v756_v30 = vadd.f32 %v754_v42, %v551_v21  ;;  %v762_v52 = vadd.f32 %v760_v47, %v557_v17  ;;  %v768_v5 = vadd.f32 %v766_v50, %v563_v2 }
 0x10f   : > { %v933_v56 = vadd.f32 %v928_v33, %v2455_v0  ;;  %v774_v61 = vadd.f32 %v772_v55, %v569_v23  ;;  %v780_v39 = vadd.f32 %v778_v48, %v575_v3  ;;  %v786_v25 = vadd.f32 %v784_v18, %v581_v45 }
 0x110   : > { %v792_v46 = vadd.f32 %v790_v53, %v587_v11  ;;  %v798_v22 = vadd.f32 %v796_v12, %v593_v9  ;;  %v568_v63 = vadd.f32 %v566_v36, %v371_v26  ;;  %v574_v38 = vadd.f32 %v572_v20, %v375_v43 }
 0x111   : > { %v951_v7 = vpop.permute.xlu1 %950  ;;  %v580_v21 = vadd.f32 %v578_v59, %v379_v41  ;;  %v586_v17 = vadd.f32 %v584_v49, %v383_v58  ;;  %v590_v0 = vmul.f32 %v589_v28, %v2489_v35  ;;  %v753_v45 = vmul.f32 %v752_v6, %v2540_v32 }
 0x112   : > { %v955_v9 = vadd.f32 %v951_v7, %v934_v19  ;;  %v949_v11 = vpop.permute.xlu0 %948  ;;  %v759_v3 = vmul.f32 %v758_v27, %v2540_v32  ;;  %v765_v23 = vmul.f32 %v764_v60, %v2540_v32  ;;  %v771_v26 = vmul.f32 %v770_v29, %v2540_v32 }
 0x113   : > { %v954_v43 = vadd.f32 %v949_v11, %v933_v56  ;;  %v592_v41 = vadd.f32 %v590_v0, %v387_v13  ;;  %v755_v28 = vadd.f32 %v753_v45, %v550_v44  ;;  %v777_v35 = vmul.f32 %v776_v10, %v2540_v32 }
 0x114   : > { %v959_v6 = vmul.f32 %v957_v37, %v955_v9  ;;  %v965_v2 = vmul.f32 %v963_v51, %v955_v9  ;;  %v971_v58 = vmul.f32 %v969_v40, %v955_v9  ;;  %v2827_v15 = vstv %s2417_s3  ;;  %s1752_s3 = smov 64  }
 0x115   : > { %v977_v27 = vmul.f32 %v2827_v15, %v955_v9  ;;  %v2828_v16 = vstv %s2423_s22  ;;  %v2829_v60 = vstv %s2425_s15  ;;  %v2830_v54 = vstv %s2429_s13  ;;  %s1753_s13 = smov 80   ;;  %s1755_s15 = smov 112  }
 0x116   : > { %v983_v36 = vmul.f32 %v2828_v16, %v955_v9  ;;  %v989_v62 = vmul.f32 %v2829_v60, %v955_v9  ;;  %v995_v29 = vmul.f32 %v2830_v54, %v955_v9  ;;  %v2831_v20 = vstv %s2431_s9  ;;  %s1480_s22 = sshll.u32 %s189_s17, 4 }
 0x117   : > { %v1001_v13 = vmul.f32 %v2831_v20, %v955_v9  ;;  %v2594_v59 = vadd.f32 %v959_v6, %v756_v30  ;;  %v2596_v49 = vadd.f32 %v965_v2, %v762_v52  ;;  %v2598_v10 = vadd.f32 %v971_v58, %v768_v5  ;;  %s191_s19 = scalar_lea.vmem [#allocation5], %s1480_s22 }
 0x118   : > { %v2600_v44 = vadd.f32 %v977_v27, %v774_v61  ;;  %v2602_v42 = vadd.f32 %v983_v36, %v780_v39  ;;  %v2604_v47 = vadd.f32 %v989_v62, %v786_v25  ;;  %v2606_v50 = vadd.f32 %v995_v29, %v792_v46  ;;  %s1380_s29 = sshll.u32 %s191_s19, 4  ;;  %s2732_s29 = int_to_ptr.vmem [resolvable:$true] %s1380_s29 }
 0x119   : > { %v2608_v55 = vadd.f32 %v1001_v13, %v798_v22  ;;  %v1140_v31 = vcombine.low %v2594_v59, %v2598_v10  ;;  %v761_v18 = vadd.f32 %v759_v3, %v556_v24  ;;  %v767_v53 = vadd.f32 %v765_v23, %v562_v57  ;;  %s1659_s9 = scalar_lea.vmem %s2732_s29, 256  ;;  %p1666_p0 = scmp.lt.s32.totalorder %s2732_s29, %s1664_s11 }
 0x11a   : > { %v1156_v48 = vcombine.low %v2596_v49, %v2600_v44  ;;  %v1172_v12 = vcombine.low %v2602_v42, %v2606_v50  ;;  %v773_v33 = vadd.f32 %v771_v26, %v568_v63  ;;  %v779_v30 = vadd.f32 %v777_v35, %v574_v38  ;;  %p1660_p10 = scmp.ne.s32.totalorder %s2732_s29, %s1659_s9  ;;  %p1667_p1 = scmp.lt.s32.totalorder %s1665_s18, %s1659_s9 }
 0x11b   : > { %v1188_v19 = vcombine.low %v2604_v47, %v2608_v55  ;;  %v1148_v52 = vrot.slane %v1140_v31, %v2461_v1  ;;  %v783_v56 = vmul.f32 %v782_v8, %v2540_v32  ;;  %v789_v24 = vmul.f32 %v788_v4, %v2540_v32 }
 0x11c   : > { %v1164_v5 = vrot.slane %v1156_v48, %v2461_v1  ;;  %v1180_v57 = vrot.slane %v1172_v12, %v2461_v1  ;;  %v795_v39 = vmul.f32 %v794_v34, %v2540_v32  ;;  %v958_v25 = vmul.f32 %v957_v37, %v954_v43  ;;  %p1661_p11 = pnand %p1660_p10, %p1817_p4  ;;  %p1668_p2 = por %p1667_p1, %p1666_p0 }
 0x11d   : > { %v1196_v61 = vrot.slane %v1188_v19, %v2461_v1  ;;  %v785_v22 = vadd.f32 %v783_v56, %v580_v21  ;;  %v791_v63 = vadd.f32 %v789_v24, %v586_v17  ;;  %v964_v8 = vmul.f32 %v963_v51, %v954_v43 }
 0x11e   : > { %v1204_v46 = vcombine.low %v1148_v52, %v1164_v5  ;;  %v797_v4 = vadd.f32 %v795_v39, %v592_v41  ;;  %v960_v7 = vadd.f32 %v958_v25, %v755_v28  ;;  %v970_v0 = vmul.f32 %v969_v40, %v954_v43  ;;  %p1662_p13 = pneg %p1661_p11 }
 0x11f   : > { %v1236_v38 = vcombine.low %v1180_v57, %v1196_v61  ;;  %v966_v9 = vadd.f32 %v964_v8, %v761_v18  ;;  %v2832_v34 = vmov %v2827_v15  ;;  %v2833_v11 = vmov %v2828_v16 }
 0x120   : > { %v2638_v45 = vrot.slane %v1204_v46, %v2465_v14  ;;  %v976_v32 = vmul.f32 %v2832_v34, %v954_v43  ;;  %v982_v37 = vmul.f32 %v2833_v11, %v954_v43  ;;  %v972_v21 = vadd.f32 %v970_v0, %v767_v53  ;;  %p1669_p3 = pnand %p1668_p2, %p1662_p13 }
 0x121   : > { %v2645_v3 = vrot.slane %v1236_v38, %v2465_v14  ;;  %v2834_v17 = vmov %v2829_v60  ;;  %v2835_v51 = vmov %v2830_v54  ;;  %v2836_v35 = vmov %v2831_v20 }
 0x122   : > { %v988_v23 = vmul.f32 %v2834_v17, %v954_v43  ;;  %v994_v26 = vmul.f32 %v2835_v51, %v954_v43  ;;  %v978_v41 = vadd.f32 %v976_v32, %v773_v33  ;;  %v984_v28 = vadd.f32 %v982_v37, %v779_v30 }
 0x123   : > { %v1000_v40 = vmul.f32 %v2836_v35, %v954_v43  ;;  %v1205_v6 = vcombine.high %v1148_v52, %v1164_v5  ;;  %v1269_v2 = vcombine.high %v2638_v45, %v2645_v3  ;;  %v1004_v27 = vcombine.low %v960_v7, %v972_v21 }
 0x124   : > { %v990_v58 = vadd.f32 %v988_v23, %v785_v22  ;;  %v996_v15 = vadd.f32 %v994_v26, %v791_v63  ;;  %v1020_v36 = vcombine.low %v966_v9, %v978_v41  ;;  %v1237_v62 = vcombine.high %v1180_v57, %v1196_v61 }
 0x125   : > { %v1002_v16 = vadd.f32 %v1000_v40, %v797_v4  ;;  %v2656_v60 = vrot.slane %v1205_v6, %v2465_v14  ;;  %1305 = vrot.lane.b32.xlu1 %v1269_v2, %s1749_s0  ;;  %v1012_v54 = vrot.slane %v1004_v27, %v2461_v1  ;;  %v1005_v43 = vcombine.high %v960_v7, %v972_v21 }
 0x126   : > { %v1036_v29 = vcombine.low %v984_v28, %v996_v15  ;;  %v1021_v20 = vcombine.high %v966_v9, %v978_v41  ;;  %v1028_v13 = vrot.slane %v1020_v36, %v2461_v1  ;;  %v2662_v48 = vrot.slane %v1237_v62, %v2465_v14 }
 0x127   : > { %v1052_v31 = vcombine.low %v990_v58, %v1002_v16  ;;  %v1037_v18 = vcombine.high %v984_v28, %v996_v15  ;;  %v1019_v12 = vrot.slane %v1005_v43, %v2461_v1  ;;  %v1053_v33 = vcombine.high %v990_v58, %v1002_v16 }
 0x128   : > { %v1044_v53 = vrot.slane %v1036_v29, %v2461_v1  ;;  %v1035_v19 = vrot.slane %v1021_v20, %v2461_v1  ;;  %v1068_v52 = vcombine.low %v1012_v54, %v1028_v13  ;;  %v1069_v5 = vcombine.high %v1012_v54, %v1028_v13 }
 0x129   : > { %v1060_v30 = vrot.slane %v1052_v31, %v2461_v1  ;;  %v1270_v56 = vcombine.low %v2656_v60, %v2662_v48  ;;  %v1051_v24 = vrot.slane %v1037_v18, %v2461_v1  ;;  %v1067_v57 = vrot.slane %v1053_v33, %v2461_v1 }
 0x12a   : > { %v1084_v61 = vcombine.low %v1019_v12, %v1035_v19  ;;  %v1271_v39 = vcombine.high %v2656_v60, %v2662_v48  ;;  %v2675_v25 = vrot.slane %v1068_v52, %v2465_v14  ;;  %v1083_v22 = vrot.slane %v1069_v5, %v2465_v14 }
 0x12b   : > { %v1100_v46 = vcombine.low %v1044_v53, %v1060_v30  ;;  %v1101_v63 = vcombine.high %v1044_v53, %v1060_v30  ;;  %v1116_v38 = vcombine.low %v1051_v24, %v1067_v57  ;;  %v1141_v4 = vcombine.high %v2594_v59, %v2598_v10 }
 0x12c   : > { %v1092_v8 = vrot.slane %v1084_v61, %v2465_v14  ;;  %v1157_v7 = vcombine.high %v2596_v49, %v2600_v44  ;;  %v1173_v34 = vcombine.high %v2602_v42, %v2606_v50  ;;  %v1189_v32 = vcombine.high %v2604_v47, %v2608_v55 }
 0x12d   : > { %v2684_v0 = vrot.slane %v1100_v46, %v2465_v14  ;;  %v1115_v9 = vrot.slane %v1101_v63, %v2465_v14  ;;  %v1124_v11 = vrot.slane %v1116_v38, %v2465_v14  ;;  %v1155_v37 = vrot.slane %v1141_v4, %v2461_v1 }
 0x12e   : > { %v1171_v59 = vrot.slane %v1157_v7, %v2461_v1  ;;  %v1085_v10 = vcombine.high %v1019_v12, %v1035_v19  ;;  %v1187_v17 = vrot.slane %v1173_v34, %v2461_v1  ;;  %v1203_v42 = vrot.slane %v1189_v32, %v2461_v1 }
 0x12f   : > { %v1133_v49 = vcombine.high %v2675_v25, %v2684_v0  ;;  %v1134_v44 = vcombine.low %v1083_v22, %v1115_v9  ;;  %v1135_v21 = vcombine.high %v1083_v22, %v1115_v9  ;;  %v1136_v23 = vcombine.low %v1092_v8, %v1124_v11 }
 0x130   : > { %v1137_v51 = vcombine.high %v1092_v8, %v1124_v11  ;;  %v1220_v50 = vcombine.low %v1155_v37, %v1171_v59  ;;  %v1099_v47 = vrot.slane %v1085_v10, %v2465_v14  ;;  %v1117_v55 = vcombine.high %v1051_v24, %v1067_v57 }
 0x131   : > { %1277 = vrot.lane.b32.xlu0 %v1133_v49, %s1749_s0  ;;  %1281 = vrot.lane.b32.xlu1 %v1134_v44, %s1750_s1  ;;  %v1221_v26 = vcombine.high %v1155_v37, %v1171_v59  ;;  %v1252_v28 = vcombine.low %v1187_v17, %v1203_v42  ;;  %v1253_v35 = vcombine.high %v1187_v17, %v1203_v42 }
 0x132   : > { %v1228_v41 = vrot.slane %v1220_v50, %v2465_v14  ;;  %v1268_v40 = vcombine.low %v2638_v45, %v2645_v3  ;;  %v1131_v6 = vrot.slane %v1117_v55, %v2465_v14  ;;  %v1132_v2 = vcombine.low %v2675_v25, %v2684_v0 }
 0x133   : > { %v1235_v1 = vrot.slane %v1221_v26, %v2465_v14  ;;  %v1260_v58 = vrot.slane %v1252_v28, %v2465_v14  ;;  %v1267_v15 = vrot.slane %v1253_v35, %v2465_v14  ;;  %v1357_v14 = vpop.permute.xlu0 %1356 }
 0x134   : > { %v1138_v27 = vcombine.low %v1099_v47, %v1131_v6  ;;  %v1139_v16 = vcombine.high %v1099_v47, %v1131_v6 }
 0x135   : > { %1285 = vrot.lane.b32.xlu0 %v1135_v21, %s1751_s2  ;;  %1309 = vrot.lane.b32.xlu1 %v1270_v56, %s1750_s1  ;;  %v1272_v36 = vcombine.low %v1228_v41, %v1260_v58  ;;  %v1273_v60 = vcombine.high %v1228_v41, %v1260_v58  ;;  %v1274_v62 = vcombine.low %v1235_v1, %v1267_v15 }
 0x136   : > { %v1275_v45 = vcombine.high %v1235_v1, %v1267_v15 }
 0x139   : > { %1289 = vrot.lane.b32.xlu0 %v1136_v23, %s1752_s3  ;;  %1313 = vrot.lane.b32.xlu1 %v1271_v39, %s1751_s2 }
 0x13d   : > { %1293 = vrot.lane.b32.xlu0 %v1137_v51, %s1753_s13  ;;  %1317 = vrot.lane.b32.xlu1 %v1272_v36, %s1752_s3 }
 0x141   : > { %1297 = vrot.lane.b32.xlu0 %v1138_v27, %s1754_s14  ;;  %1321 = vrot.lane.b32.xlu1 %v1273_v60, %s1753_s13 }
 0x145   : > { %1301 = vrot.lane.b32.xlu0 %v1139_v16, %s1755_s15  ;;  %1325 = vrot.lane.b32.xlu1 %v1274_v62, %s1754_s14 }
 0x149   : > { %1329 = vrot.lane.b32.xlu1 %v1275_v45, %s1755_s15 }
 0x197   : > { %v1306_v3 = vpop.permute.xlu1 %1305 }
 0x198   : > { %v1346_v5 = vsel %vm1332_vm2, %v1268_v40, %v1306_v3 }
 0x1a3   : > { %v1278_v54 = vpop.permute.xlu0 %1277  ;;  %v1282_v29 = vpop.permute.xlu1 %1281 }
 0x1a4   : > { %v1333_v53 = vsel %vm1332_vm2, %v1132_v2, %v1278_v54 }
 0x1a5   : > { %v1335_v12 = vsel %vm1334_vm3, %v1333_v53, %v1282_v29 }
 0x1a7   : > { %v1286_v43 = vpop.permute.xlu0 %1285  ;;  %v1310_v20 = vpop.permute.xlu1 %1309 }
 0x1a8   : > { %v1337_v30 = vsel %vm1336_vm4, %v1335_v12, %v1286_v43  ;;  %v1347_v24 = vsel %vm1334_vm3, %v1346_v5, %v1310_v20 }
 0x1ab   : > { %v1290_v13 = vpop.permute.xlu0 %1289  ;;  %v1314_v31 = vpop.permute.xlu1 %1313 }
 0x1ac   : > { %v1339_v52 = vsel %vm1338_vm5, %v1337_v30, %v1290_v13  ;;  %v1348_v25 = vsel %vm1336_vm4, %v1347_v24, %v1314_v31 }
 0x1af   : > { %v1294_v48 = vpop.permute.xlu0 %1293  ;;  %v1318_v18 = vpop.permute.xlu1 %1317 }
 0x1b0   : > { %v1341_v56 = vsel %vm1340_vm6, %v1339_v52, %v1294_v48  ;;  %v1349_v22 = vsel %vm1338_vm5, %v1348_v25, %v1318_v18 }
 0x1b3   : > { %v1298_v19 = vpop.permute.xlu0 %1297  ;;  %v1322_v33 = vpop.permute.xlu1 %1321 }
 0x1b4   : > { %v1343_v57 = vsel %vm1342_vm7, %v1341_v56, %v1298_v19  ;;  %v1350_v8 = vsel %vm1340_vm6, %v1349_v22, %v1322_v33 }
 0x1b7   : > { %v1302_v61 = vpop.permute.xlu0 %1301  ;;  %v1326_v39 = vpop.permute.xlu1 %1325 }
 0x1b8   : > { %v1345_v46 = vsel %vm1344_vm8, %v1343_v57, %v1302_v61  ;;  %v1351_v38 = vsel %vm1342_vm7, %v1350_v8, %v1326_v39 }
 0x1b9   : > { %v1359_v63 = vadd.f32 %v1357_v14, %v1345_v46 }
 0x1bb   : > { %1361 = vst [vmem:[%s191_s19] sm:$0xff] %v1359_v63  ;;  %v1330_v4 = vpop.permute.xlu1 %1329 }
 0x1bc   : > { %v1352_v7 = vsel %vm1344_vm8, %v1351_v38, %v1330_v4 }
 0x1bd   : > { %v1360_v0 = vadd.f32 %v1357_v14, %v1352_v7 }
 0x1bf   : > { %1362 = vst [vmem:[%s191_s19 + $0x8] sm:$0xff] %v1360_v0 }
 0x1c0   : > { %1672 = shalt.err (!%p1669_p3)
}
 0x1c1   : > { %s1673_s21 = scalar_lea.hbm %s2730_s7, 256  ;;  %s1677_s28 = scalar_lea.hbm %s2840_s6, 512 }
 0x1c2   : > { %p1674_p5 = scmp.ne.s32.totalorder %s2730_s7, %s1673_s21  ;;  %p1678_p9 = scmp.lt.u32.totalorder %s2730_s7, %s2840_s6 }
 0x1c3   : > { %p1679_p12 = scmp.lt.u32.totalorder %s1677_s28, %s1673_s21  ;;  %p1681_p11 = scmp.lt.u32.totalorder %s1673_s21, %s2730_s7 }
 0x1c4   : > { %p1675_p6 = pnand %p1674_p5, %p1817_p4 }
 0x1c5   : > { %p1680_p10 = por %p1679_p12, %p1678_p9 }
 0x1c6   : > { %p1676_p7 = pneg %p1675_p6 }
 0x1c7   : > { %p1682_p13 = por %p1681_p11, %p1680_p10 }
 0x1c9   : > { %p1683_p0 = pnand %p1682_p13, %p1676_p7 }
 0x1cb   : > { %1686 = shalt.err (!%p1683_p0)
}
 0x1cc   : > { %1569 = dma.vmem_to_hbm [thread:$0]  (%p1817_p4), %s2732_s29, 256, %s2730_s7, %s1364_s8  }
 0x1cd PF: > { %s2841_s12 = sld [smem:[#allocation13_spill]]  ;;  %s2842_s0 = sld [smem:[#allocation8_spill]] }
 0x1d3   : > { %p1581_p1 = scmp.ge.s32.totalorder %s2841_s12, 2  ;;  %s1392_s2 = sand.u32 1, %s2842_s0  }
 0x1d4   : > { %s1393_s3 = scalar_lea.sflag [#allocation3], %s1392_s2 }
 0x1d5   : > { %p1576_p2 = pnand %p1581_p1, %p1824_p8 }
 0x1d7   : > { %1716 = dma.done.wait (!%p1576_p2), %s1393_s3, 256  }
 0x1d8   : > { %1718 = vsyncadd (!%p1576_p2), %s1393_s3, 4294967040  ;;  %s17_s17 = sadd.s32 1, %s2841_s12   ;;  %s2844_s12 = sld [smem:[#allocation9_spill]] }
 0x1d9   : > { %p14_p3 = scmp.ge.s32.totalorder %s17_s17, 4   ;;  %s2845_s13 = sld [smem:[#allocation10_spill]] }
 0x1da   : > { %s2846_s14 = sld [smem:[#allocation17_spill]]  ;;  %s2847_s15 = sld [smem:[#allocation12_spill]] }
 0x1db   : > { %s2848_s16 = sld [smem:[#allocation14_spill]]  ;;  %16 = sbr.rel (!%p14_p3) target bundleno = 10 (0xa), region = 76 }
 0x1e2   :  { %1398 = vsyncpa [#allocation3], 1 }
 0x1e3   :  { %1400 = vsyncpa [#allocation3 + $0x1], 1 }
 0x1e4   :  { %1401 = vsyncpa [#allocation4], 1 }
 0x1e5   :  { %1403 = vsyncpa [#allocation4 + $0x1], 1 }

</bundles_post_ra>
